<compile_context>
chip_gen: v6e
topology: v6e:2x2x1
jax: 0.10.0
libtpu: 0.0.40
codegen_flags: <defaults>
</compile_context>

<pallas_src>
import functools

import jax
import jax.numpy as jnp
import numpy as np
from jax import lax
from jax.experimental import pallas as pl
from jax.experimental.pallas import tpu as pltpu


def _round_up(x: int, m: int) -> int:
  return (x + m - 1) // m * m


def _choose_ts(T: int, Bt: int, H: int) -> int:
  """Largest divisor of T such that a (TS, Bt, H) f32 buffer stays ~<= 4 MiB."""
  cap_rows = max(8, (4 * 1024 * 1024) // max(1, Bt * H * 4))
  cap = max(1, min(T, cap_rows, 128))
  best = 1
  for d in range(1, cap + 1):
    if T % d == 0:
      best = d
  # Awkward (e.g. prime) T with no usable divisor: fall back to a single chunk.
  # TODO(synk): mask the ragged tail instead so huge prime T stays VMEM-bounded.
  if best < min(8, T) and T > cap:
    best = T
  return best


def make_rnn_kernel(depth: int, TS: int, Bt: int, H: int, compute_dtype, unroll):
  """Kernel for one (batch tile, time chunk) grid point; wavefront over layers."""
  cd = compute_dtype

  def kernel(*refs):
    # refs: proj0, w_hh0, [w_ih_l, w_hh_l, b_l for l=1..depth-1], w_out, b_out,
    #       out, hstate_scratch[, chunk_scratch, proj_scratch]
    proj0_ref = refs[0]                       # (TS, Bt, H) streamed pre-activations
    whh0_ref = refs[1]                        # (H, H)
    lrefs = refs[2:2 + 3 * (depth - 1)]
    w_out_ref = refs[2 + 3 * (depth - 1)]     # (H, N)
    b_out_ref = refs[3 + 3 * (depth - 1)]     # (1, N) f32
    out_ref = refs[4 + 3 * (depth - 1)]       # (Bt, N)
    hstate_ref = refs[5 + 3 * (depth - 1)]    # (depth, Bt, H) f32, persists over chunks
    chunk_ref = refs[6 + 3 * (depth - 1)] if depth > 1 else None  # (TS, Bt, H) cd
    proj_ref = refs[7 + 3 * (depth - 1)] if depth > 1 else None   # (TS, Bt, H) f32

    c = pl.program_id(1)

    @pl.when(c == 0)
    def _init():
      hstate_ref[...] = jnp.zeros_like(hstate_ref)

    # ---- layer 0: input projection already hoisted to XLA; recurrence only. ----
    def step0(t, h):
      h_new = jnp.tanh(
          proj0_ref[t]
          + jnp.dot(h.astype(cd), whh0_ref[...],
                    preferred_element_type=jnp.float32))
      if depth > 1:
        chunk_ref[t] = h_new.astype(cd)
      return h_new

    h = lax.fori_loop(0, TS, step0, hstate_ref[0], unroll=unroll)
    hstate_ref[0] = h

    # ---- layers 1..depth-1: chunk-wide input GEMM, then the serial recurrence. ----
    for l in range(1, depth):
      w_ih_ref = lrefs[3 * (l - 1) + 0]
      w_hh_ref = lrefs[3 * (l - 1) + 1]
      b_ref = lrefs[3 * (l - 1) + 2]

      inp2d = chunk_ref[...].reshape(TS * Bt, H)
      proj_ref[...] = (jnp.dot(inp2d.astype(cd), w_ih_ref[...],
                               preferred_element_type=jnp.float32)
                       + b_ref[...]).reshape(TS, Bt, H)

      store_seq = l < depth - 1   # last layer: only the final hidden state is needed

      def step(t, h, *, w_hh_ref=w_hh_ref, store_seq=store_seq):
        h_new = jnp.tanh(
            proj_ref[t]
            + jnp.dot(h.astype(cd), w_hh_ref[...],
                      preferred_element_type=jnp.float32))
        if store_seq:
          chunk_ref[t] = h_new.astype(cd)
        return h_new

      h = lax.fori_loop(0, TS, step, hstate_ref[l], unroll=unroll)
      hstate_ref[l] = h

    # ---- linear head on the final hidden state (only at the last time chunk). ----
    @pl.when(c == pl.num_programs(1) - 1)
    def _finish():
      out_ref[...] = (jnp.dot(h.astype(cd), w_out_ref[...],
                              preferred_element_type=jnp.float32)
                      + b_out_ref[...])

  return kernel


def init_params(key, input_channels, latent_dim, depth, num_classes):
  """Deterministic init mimicking PyTorch's uniform(-1/sqrt(H), 1/sqrt(H))."""
  bound = 1.0 / np.sqrt(latent_dim)
  params = {"layers": []}
  for l in range(depth):
    in_feat = input_channels if l == 0 else latent_dim
    key, k1, k2, k3, k4 = jax.random.split(key, 5)
    params["layers"].append({
        # stored already transposed: (in_features, H)
        "w_ih": jax.random.uniform(k1, (in_feat, latent_dim), jnp.float32, -bound, bound),
        "w_hh": jax.random.uniform(k2, (latent_dim, latent_dim), jnp.float32, -bound, bound),
        "b_ih": jax.random.uniform(k3, (1, latent_dim), jnp.float32, -bound, bound),
        "b_hh": jax.random.uniform(k4, (1, latent_dim), jnp.float32, -bound, bound),
    })
  key, k5, k6 = jax.random.split(key, 3)
  params["w_out"] = jax.random.uniform(k5, (latent_dim, num_classes), jnp.float32,
                                       -bound, bound)
  params["b_out"] = jax.random.uniform(k6, (1, num_classes), jnp.float32,
                                       -bound, bound)
  return params


@functools.partial(jax.jit,
                   static_argnames=("depth", "latent_dim", "num_classes",
                                    "compute_dtype"))
def rnn_forward(x, params, *, depth, latent_dim, num_classes,
                compute_dtype=jnp.float32):
  """x: (B, T, C) float32, batch_first like the PyTorch module. Returns (B, num_classes)."""
  B, T, C = x.shape
  H = _round_up(latent_dim, 128)          # lane-dense hidden dim
  N = _round_up(num_classes, 128)         # lane-dense logits (no masked partial stores)
  Bt = min(_round_up(B, 8), 256)          # batch tile: up to 256 rows feeds 256x256 MXU
  B_pad = _round_up(B, Bt)
  nb = B_pad // Bt
  TS = _choose_ts(T, Bt, H)               # time chunk; VMEM now independent of T
  nc = T // TS
  assert nc * TS == T

  cd = compute_dtype
  cd_size = jnp.dtype(cd).itemsize

  # ---- Hoisted layer-0 projection (no recurrent dependence): one XLA GEMM. ----
  l0 = params["layers"][0]
  proj0 = jnp.einsum("btc,ch->bth", x.astype(jnp.float32), l0["w_ih"]) \
      + (l0["b_ih"] + l0["b_hh"])                              # (B, T, latent) f32
  proj0 = jnp.transpose(proj0, (1, 0, 2))                       # time-major
  proj0 = jnp.pad(proj0, ((0, 0), (0, B_pad - B), (0, H - latent_dim)))
  proj0 = proj0.astype(cd)                                      # (T, B_pad, H)

  single = pl.Buffered(1)   # weights never change across grid steps -> single buffer

  flat = [proj0]
  in_specs = [pl.BlockSpec((TS, Bt, H), lambda i, c: (c, i, 0))]

  whh0 = jnp.pad(l0["w_hh"], ((0, H - latent_dim), (0, H - latent_dim))).astype(cd)
  flat.append(whh0)
  in_specs.append(pl.BlockSpec((H, H), lambda i, c: (0, 0), pipeline_mode=single))

  for l in range(1, depth):
    lp = params["layers"][l]
    w_ih = jnp.pad(lp["w_ih"], ((0, H - latent_dim), (0, H - latent_dim))).astype(cd)
    w_hh = jnp.pad(lp["w_hh"], ((0, H - latent_dim), (0, H - latent_dim))).astype(cd)
    b = jnp.pad(lp["b_ih"] + lp["b_hh"], ((0, 0), (0, H - latent_dim)))   # f32
    flat += [w_ih, w_hh, b]
    in_specs += [
        pl.BlockSpec((H, H), lambda i, c: (0, 0), pipeline_mode=single),
        pl.BlockSpec((H, H), lambda i, c: (0, 0), pipeline_mode=single),
        pl.BlockSpec((1, H), lambda i, c: (0, 0), pipeline_mode=single),
    ]

  w_out = jnp.pad(params["w_out"], ((0, H - latent_dim),
                                    (0, N - num_classes))).astype(cd)
  b_out = jnp.pad(params["b_out"], ((0, 0), (0, N - num_classes)))
  flat += [w_out, b_out]
  in_specs += [pl.BlockSpec((H, N), lambda i, c: (0, 0), pipeline_mode=single),
               pl.BlockSpec((1, N), lambda i, c: (0, 0), pipeline_mode=single)]

  out_specs = pl.BlockSpec((Bt, N), lambda i, c: (i, 0))

  scratch = [pltpu.VMEM((depth, Bt, H), jnp.float32)]       # per-layer carried h
  if depth > 1:
    scratch.append(pltpu.VMEM((TS, Bt, H), cd))              # current-layer chunk outputs
    scratch.append(pltpu.VMEM((TS, Bt, H), jnp.float32))     # projected inputs (l > 0)

  unroll = True if TS <= 32 else (4 if H > 256 else 8)
  kernel = make_rnn_kernel(depth, TS, Bt, H, cd, unroll)

  # VMEM budget: double-buffered proj0 chunk + out block, single-buffered weights,
  # plus persistent scratch. Only raise the scoped limit when it would be tight,
  # and never above ~85% of the chip's physical VMEM.
  w_bytes = (H * H * cd_size
             + (depth - 1) * (2 * H * H * cd_size + H * 4)
             + H * N * cd_size + N * 4)
  vmem_est = (2 * TS * Bt * H * cd_size + 2 * Bt * N * 4 + w_bytes
              + depth * Bt * H * 4
              + (TS * Bt * H * (cd_size + 4) if depth > 1 else 0))

  cp_kwargs = dict(dimension_semantics=("parallel", "arbitrary"))
  if int(vmem_est * 3 // 2) > 16 * 1024 * 1024:
    try:
      phys = int(pltpu.get_tpu_info().vmem_capacity_bytes)
    except Exception:
      phys = 64 * 1024 * 1024        # conservative (v7x per-TensorCore VMEM)
    cp_kwargs["vmem_limit_bytes"] = min(int(phys * 85 // 100),
                                        max(int(vmem_est * 3 // 2),
                                            32 * 1024 * 1024))

  out = pl.pallas_call(
      kernel,
      grid=(nb, nc),
      out_shape=jax.ShapeDtypeStruct((B_pad, N), jnp.float32),
      in_specs=in_specs,
      out_specs=out_specs,
      scratch_shapes=scratch,
      compiler_params=pltpu.CompilerParams(**cp_kwargs),
  )(*flat)
  return out[:B, :num_classes]


def rnn_reference(x, params):
  """Pure-JAX reference of the same math (correctness check)."""
  B, T, C = x.shape
  H = params["layers"][0]["w_hh"].shape[0]
  seq = x
  for lp in params["layers"]:
    h = jnp.zeros((B, H), jnp.float32)
    outs = []
    for t in range(T):
      h = jnp.tanh(seq[:, t, :] @ lp["w_ih"] + lp["b_ih"]
                   + h @ lp["w_hh"] + lp["b_hh"])
      outs.append(h)
    seq = jnp.stack(outs, axis=1)
  return seq[:, -1, :] @ params["w_out"] + params["b_out"]


if __name__ == "__main__":
  # Small shapes consistent with the module's forward: x is (B, T, input_channels).
  B, T = 2, 8
  input_channels, latent_dim, depth, num_classes = 4, 32, 2, 10
  ff_dropout = 0.1  # training-only inter-layer dropout: no-op at inference.

  key = jax.random.PRNGKey(0)
  key, kx = jax.random.split(key)
  x = jax.random.normal(kx, (B, T, input_channels), jnp.float32)
  params = init_params(key, input_channels, latent_dim, depth, num_classes)

  ref = rnn_reference(x, params)

  # f32 MXU path: strict check against the pure-JAX reference.
  logits_f32 = rnn_forward(x, params, depth=depth, latent_dim=latent_dim,
                           num_classes=num_classes, compute_dtype=jnp.float32)
  logits_f32 = jax.block_until_ready(logits_f32)
  np.testing.assert_allclose(np.asarray(logits_f32), np.asarray(ref),
                             atol=1e-5, rtol=1e-5)

  # bf16 MXU / streamed-activation path (f32 accumulation + f32 tanh): loose check.
  logits_bf16 = rnn_forward(x, params, depth=depth, latent_dim=latent_dim,
                            num_classes=num_classes, compute_dtype=jnp.bfloat16)
  logits_bf16 = jax.block_until_ready(logits_bf16)
  np.testing.assert_allclose(np.asarray(logits_bf16), np.asarray(ref),
                             atol=5e-2, rtol=5e-2)

  print("KERNEL_OK")
</pallas_src>

<mosaic_0001>
module attributes {stable_mosaic.version = 11 : i64} {
  func.func @kernel(%arg0: i32, %arg1: i32, %arg2: memref<8x8x128xf32, #tpu.memory_space<vmem>>, %arg3: memref<128x128xf32, #tpu.memory_space<vmem>>, %arg4: memref<128x128xf32, #tpu.memory_space<vmem>>, %arg5: memref<128x128xf32, #tpu.memory_space<vmem>>, %arg6: memref<1x128xf32, #tpu.memory_space<vmem>>, %arg7: memref<128x128xf32, #tpu.memory_space<vmem>>, %arg8: memref<1x128xf32, #tpu.memory_space<vmem>>, %arg9: memref<8x128xf32, #tpu.memory_space<vmem>>, %arg10: memref<2x8x128xf32, #tpu.memory_space<vmem>>, %arg11: memref<8x8x128xf32, #tpu.memory_space<vmem>>, %arg12: memref<8x8x128xf32, #tpu.memory_space<vmem>>) attributes {dimension_semantics = [#tpu.dimension_semantics<parallel>, #tpu.dimension_semantics<arbitrary>], iteration_bounds = array<i64: 1, 1>, scalar_prefetch = 0 : i64, scratch_operands = 3 : i64, tpu.core_type = #tpu.core_type<tc>, window_params = [{transform_indices = @transform_0, window_bounds = array<i64: 8, 8, 128>}, {pipeline_mode = #tpu.pipeline_mode<synchronous>, transform_indices = @transform_1, window_bounds = array<i64: 128, 128>}, {pipeline_mode = #tpu.pipeline_mode<synchronous>, transform_indices = @transform_2, window_bounds = array<i64: 128, 128>}, {pipeline_mode = #tpu.pipeline_mode<synchronous>, transform_indices = @transform_3, window_bounds = array<i64: 128, 128>}, {pipeline_mode = #tpu.pipeline_mode<synchronous>, transform_indices = @transform_4, window_bounds = array<i64: 1, 128>}, {pipeline_mode = #tpu.pipeline_mode<synchronous>, transform_indices = @transform_5, window_bounds = array<i64: 128, 128>}, {pipeline_mode = #tpu.pipeline_mode<synchronous>, transform_indices = @transform_6, window_bounds = array<i64: 1, 128>}, {transform_indices = @transform_7, window_bounds = array<i64: 8, 128>}]} {
    %c0_i32 = arith.constant 0 : i32
    %0 = arith.cmpi eq, %arg1, %c0_i32 : i32
    %1 = arith.extui %0 : i1 to i32
    %c0_i32_0 = arith.constant 0 : i32
    %2 = arith.cmpi ne, %1, %c0_i32_0 : i32
    scf.if %2 {
      %cst_129 = arith.constant 0.000000e+00 : f32
      %169 = vector.broadcast %cst_129 : f32 to vector<2x8x128xf32>
      %c0_130 = arith.constant 0 : index
      %c0_131 = arith.constant 0 : index
      %c0_132 = arith.constant 0 : index
      %170 = vector.load %arg10[%c0_130, %c0_131, %c0_132] : memref<2x8x128xf32, #tpu.memory_space<vmem>>, vector<2x8x128xf32>
      tpu.vector_store %arg10[%c0_130, %c0_131, %c0_132], %169 {strides = array<i32>} : memref<2x8x128xf32, #tpu.memory_space<vmem>>, vector<2x8x128xf32>,
    } else {
    }
    %c0 = arith.constant 0 : index
    %c0_1 = arith.constant 0 : index
    %c0_2 = arith.constant 0 : index
    %3 = vector.load %arg10[%c0, %c0_1, %c0_2] : memref<2x8x128xf32, #tpu.memory_space<vmem>>, vector<1x8x128xf32>
    %4 = vector.shape_cast %3 : vector<1x8x128xf32> to vector<8x128xf32>
    %c0_i32_3 = arith.constant 0 : i32
    %5 = arith.index_cast %c0_i32_3 : i32 to index
    %c0_4 = arith.constant 0 : index
    %c0_5 = arith.constant 0 : index
    %6 = vector.load %arg2[%5, %c0_4, %c0_5] : memref<8x8x128xf32, #tpu.memory_space<vmem>>, vector<1x8x128xf32>
    %7 = vector.shape_cast %6 : vector<1x8x128xf32> to vector<8x128xf32>
    %c0_6 = arith.constant 0 : index
    %c0_7 = arith.constant 0 : index
    %8 = vector.load %arg3[%c0_6, %c0_7] : memref<128x128xf32, #tpu.memory_space<vmem>>, vector<128x128xf32>
    %cst = arith.constant dense<0.000000e+00> : vector<8x128xf32>
    %9 = tpu.matmul %4, %8, %cst {dimension_numbers = #tpu.dot_dimension_numbers<[1], [0], [0], [1], [0, 0, 1, 1], [], []>} : vector<8x128xf32>, vector<128x128xf32>, vector<8x128xf32> -> vector<8x128xf32>
    %10 = arith.addf %7, %9 : vector<8x128xf32>
    %11 = math.tanh %10 : vector<8x128xf32>
    %12 = arith.index_cast %c0_i32_3 : i32 to index
    %c0_8 = arith.constant 0 : index
    %c0_9 = arith.constant 0 : index
    %13 = vector.load %arg11[%12, %c0_8, %c0_9] : memref<8x8x128xf32, #tpu.memory_space<vmem>>, vector<1x8x128xf32>
    %14 = vector.shape_cast %13 : vector<1x8x128xf32> to vector<8x128xf32>
    %15 = vector.shape_cast %11 : vector<8x128xf32> to vector<1x8x128xf32>
    tpu.vector_store %arg11[%12, %c0_8, %c0_9], %15 {strides = array<i32>} : memref<8x8x128xf32, #tpu.memory_space<vmem>>, vector<1x8x128xf32>,
    %c1_i32 = arith.constant 1 : i32
    %16 = arith.index_cast %c1_i32 : i32 to index
    %c0_10 = arith.constant 0 : index
    %c0_11 = arith.constant 0 : index
    %17 = vector.load %arg2[%16, %c0_10, %c0_11] : memref<8x8x128xf32, #tpu.memory_space<vmem>>, vector<1x8x128xf32>
    %18 = vector.shape_cast %17 : vector<1x8x128xf32> to vector<8x128xf32>
    %c0_12 = arith.constant 0 : index
    %c0_13 = arith.constant 0 : index
    %19 = vector.load %arg3[%c0_12, %c0_13] : memref<128x128xf32, #tpu.memory_space<vmem>>, vector<128x128xf32>
    %cst_14 = arith.constant dense<0.000000e+00> : vector<8x128xf32>
    %20 = tpu.matmul %11, %19, %cst_14 {dimension_numbers = #tpu.dot_dimension_numbers<[1], [0], [0], [1], [0, 0, 1, 1], [], []>} : vector<8x128xf32>, vector<128x128xf32>, vector<8x128xf32> -> vector<8x128xf32>
    %21 = arith.addf %18, %20 : vector<8x128xf32>
    %22 = math.tanh %21 : vector<8x128xf32>
    %23 = arith.index_cast %c1_i32 : i32 to index
    %c0_15 = arith.constant 0 : index
    %c0_16 = arith.constant 0 : index
    %24 = vector.load %arg11[%23, %c0_15, %c0_16] : memref<8x8x128xf32, #tpu.memory_space<vmem>>, vector<1x8x128xf32>
    %25 = vector.shape_cast %24 : vector<1x8x128xf32> to vector<8x128xf32>
    %26 = vector.shape_cast %22 : vector<8x128xf32> to vector<1x8x128xf32>
    tpu.vector_store %arg11[%23, %c0_15, %c0_16], %26 {strides = array<i32>} : memref<8x8x128xf32, #tpu.memory_space<vmem>>, vector<1x8x128xf32>,
    %c2_i32 = arith.constant 2 : i32
    %27 = arith.index_cast %c2_i32 : i32 to index
    %c0_17 = arith.constant 0 : index
    %c0_18 = arith.constant 0 : index
    %28 = vector.load %arg2[%27, %c0_17, %c0_18] : memref<8x8x128xf32, #tpu.memory_space<vmem>>, vector<1x8x128xf32>
    %29 = vector.shape_cast %28 : vector<1x8x128xf32> to vector<8x128xf32>
    %c0_19 = arith.constant 0 : index
    %c0_20 = arith.constant 0 : index
    %30 = vector.load %arg3[%c0_19, %c0_20] : memref<128x128xf32, #tpu.memory_space<vmem>>, vector<128x128xf32>
    %cst_21 = arith.constant dense<0.000000e+00> : vector<8x128xf32>
    %31 = tpu.matmul %22, %30, %cst_21 {dimension_numbers = #tpu.dot_dimension_numbers<[1], [0], [0], [1], [0, 0, 1, 1], [], []>} : vector<8x128xf32>, vector<128x128xf32>, vector<8x128xf32> -> vector<8x128xf32>
    %32 = arith.addf %29, %31 : vector<8x128xf32>
    %33 = math.tanh %32 : vector<8x128xf32>
    %34 = arith.index_cast %c2_i32 : i32 to index
    %c0_22 = arith.constant 0 : index
    %c0_23 = arith.constant 0 : index
    %35 = vector.load %arg11[%34, %c0_22, %c0_23] : memref<8x8x128xf32, #tpu.memory_space<vmem>>, vector<1x8x128xf32>
    %36 = vector.shape_cast %35 : vector<1x8x128xf32> to vector<8x128xf32>
    %37 = vector.shape_cast %33 : vector<8x128xf32> to vector<1x8x128xf32>
    tpu.vector_store %arg11[%34, %c0_22, %c0_23], %37 {strides = array<i32>} : memref<8x8x128xf32, #tpu.memory_space<vmem>>, vector<1x8x128xf32>,
    %c3_i32 = arith.constant 3 : i32
    %38 = arith.index_cast %c3_i32 : i32 to index
    %c0_24 = arith.constant 0 : index
    %c0_25 = arith.constant 0 : index
    %39 = vector.load %arg2[%38, %c0_24, %c0_25] : memref<8x8x128xf32, #tpu.memory_space<vmem>>, vector<1x8x128xf32>
    %40 = vector.shape_cast %39 : vector<1x8x128xf32> to vector<8x128xf32>
    %c0_26 = arith.constant 0 : index
    %c0_27 = arith.constant 0 : index
    %41 = vector.load %arg3[%c0_26, %c0_27] : memref<128x128xf32, #tpu.memory_space<vmem>>, vector<128x128xf32>
    %cst_28 = arith.constant dense<0.000000e+00> : vector<8x128xf32>
    %42 = tpu.matmul %33, %41, %cst_28 {dimension_numbers = #tpu.dot_dimension_numbers<[1], [0], [0], [1], [0, 0, 1, 1], [], []>} : vector<8x128xf32>, vector<128x128xf32>, vector<8x128xf32> -> vector<8x128xf32>
    %43 = arith.addf %40, %42 : vector<8x128xf32>
    %44 = math.tanh %43 : vector<8x128xf32>
    %45 = arith.index_cast %c3_i32 : i32 to index
    %c0_29 = arith.constant 0 : index
    %c0_30 = arith.constant 0 : index
    %46 = vector.load %arg11[%45, %c0_29, %c0_30] : memref<8x8x128xf32, #tpu.memory_space<vmem>>, vector<1x8x128xf32>
    %47 = vector.shape_cast %46 : vector<1x8x128xf32> to vector<8x128xf32>
    %48 = vector.shape_cast %44 : vector<8x128xf32> to vector<1x8x128xf32>
    tpu.vector_store %arg11[%45, %c0_29, %c0_30], %48 {strides = array<i32>} : memref<8x8x128xf32, #tpu.memory_space<vmem>>, vector<1x8x128xf32>,
    %c4_i32 = arith.constant 4 : i32
    %49 = arith.index_cast %c4_i32 : i32 to index
    %c0_31 = arith.constant 0 : index
    %c0_32 = arith.constant 0 : index
    %50 = vector.load %arg2[%49, %c0_31, %c0_32] : memref<8x8x128xf32, #tpu.memory_space<vmem>>, vector<1x8x128xf32>
    %51 = vector.shape_cast %50 : vector<1x8x128xf32> to vector<8x128xf32>
    %c0_33 = arith.constant 0 : index
    %c0_34 = arith.constant 0 : index
    %52 = vector.load %arg3[%c0_33, %c0_34] : memref<128x128xf32, #tpu.memory_space<vmem>>, vector<128x128xf32>
    %cst_35 = arith.constant dense<0.000000e+00> : vector<8x128xf32>
    %53 = tpu.matmul %44, %52, %cst_35 {dimension_numbers = #tpu.dot_dimension_numbers<[1], [0], [0], [1], [0, 0, 1, 1], [], []>} : vector<8x128xf32>, vector<128x128xf32>, vector<8x128xf32> -> vector<8x128xf32>
    %54 = arith.addf %51, %53 : vector<8x128xf32>
    %55 = math.tanh %54 : vector<8x128xf32>
    %56 = arith.index_cast %c4_i32 : i32 to index
    %c0_36 = arith.constant 0 : index
    %c0_37 = arith.constant 0 : index
    %57 = vector.load %arg11[%56, %c0_36, %c0_37] : memref<8x8x128xf32, #tpu.memory_space<vmem>>, vector<1x8x128xf32>
    %58 = vector.shape_cast %57 : vector<1x8x128xf32> to vector<8x128xf32>
    %59 = vector.shape_cast %55 : vector<8x128xf32> to vector<1x8x128xf32>
    tpu.vector_store %arg11[%56, %c0_36, %c0_37], %59 {strides = array<i32>} : memref<8x8x128xf32, #tpu.memory_space<vmem>>, vector<1x8x128xf32>,
    %c5_i32 = arith.constant 5 : i32
    %60 = arith.index_cast %c5_i32 : i32 to index
    %c0_38 = arith.constant 0 : index
    %c0_39 = arith.constant 0 : index
    %61 = vector.load %arg2[%60, %c0_38, %c0_39] : memref<8x8x128xf32, #tpu.memory_space<vmem>>, vector<1x8x128xf32>
    %62 = vector.shape_cast %61 : vector<1x8x128xf32> to vector<8x128xf32>
    %c0_40 = arith.constant 0 : index
    %c0_41 = arith.constant 0 : index
    %63 = vector.load %arg3[%c0_40, %c0_41] : memref<128x128xf32, #tpu.memory_space<vmem>>, vector<128x128xf32>
    %cst_42 = arith.constant dense<0.000000e+00> : vector<8x128xf32>
    %64 = tpu.matmul %55, %63, %cst_42 {dimension_numbers = #tpu.dot_dimension_numbers<[1], [0], [0], [1], [0, 0, 1, 1], [], []>} : vector<8x128xf32>, vector<128x128xf32>, vector<8x128xf32> -> vector<8x128xf32>
    %65 = arith.addf %62, %64 : vector<8x128xf32>
    %66 = math.tanh %65 : vector<8x128xf32>
    %67 = arith.index_cast %c5_i32 : i32 to index
    %c0_43 = arith.constant 0 : index
    %c0_44 = arith.constant 0 : index
    %68 = vector.load %arg11[%67, %c0_43, %c0_44] : memref<8x8x128xf32, #tpu.memory_space<vmem>>, vector<1x8x128xf32>
    %69 = vector.shape_cast %68 : vector<1x8x128xf32> to vector<8x128xf32>
    %70 = vector.shape_cast %66 : vector<8x128xf32> to vector<1x8x128xf32>
    tpu.vector_store %arg11[%67, %c0_43, %c0_44], %70 {strides = array<i32>} : memref<8x8x128xf32, #tpu.memory_space<vmem>>, vector<1x8x128xf32>,
    %c6_i32 = arith.constant 6 : i32
    %71 = arith.index_cast %c6_i32 : i32 to index
    %c0_45 = arith.constant 0 : index
    %c0_46 = arith.constant 0 : index
    %72 = vector.load %arg2[%71, %c0_45, %c0_46] : memref<8x8x128xf32, #tpu.memory_space<vmem>>, vector<1x8x128xf32>
    %73 = vector.shape_cast %72 : vector<1x8x128xf32> to vector<8x128xf32>
    %c0_47 = arith.constant 0 : index
    %c0_48 = arith.constant 0 : index
    %74 = vector.load %arg3[%c0_47, %c0_48] : memref<128x128xf32, #tpu.memory_space<vmem>>, vector<128x128xf32>
    %cst_49 = arith.constant dense<0.000000e+00> : vector<8x128xf32>
    %75 = tpu.matmul %66, %74, %cst_49 {dimension_numbers = #tpu.dot_dimension_numbers<[1], [0], [0], [1], [0, 0, 1, 1], [], []>} : vector<8x128xf32>, vector<128x128xf32>, vector<8x128xf32> -> vector<8x128xf32>
    %76 = arith.addf %73, %75 : vector<8x128xf32>
    %77 = math.tanh %76 : vector<8x128xf32>
    %78 = arith.index_cast %c6_i32 : i32 to index
    %c0_50 = arith.constant 0 : index
    %c0_51 = arith.constant 0 : index
    %79 = vector.load %arg11[%78, %c0_50, %c0_51] : memref<8x8x128xf32, #tpu.memory_space<vmem>>, vector<1x8x128xf32>
    %80 = vector.shape_cast %79 : vector<1x8x128xf32> to vector<8x128xf32>
    %81 = vector.shape_cast %77 : vector<8x128xf32> to vector<1x8x128xf32>
    tpu.vector_store %arg11[%78, %c0_50, %c0_51], %81 {strides = array<i32>} : memref<8x8x128xf32, #tpu.memory_space<vmem>>, vector<1x8x128xf32>,
    %c7_i32 = arith.constant 7 : i32
    %82 = arith.index_cast %c7_i32 : i32 to index
    %c0_52 = arith.constant 0 : index
    %c0_53 = arith.constant 0 : index
    %83 = vector.load %arg2[%82, %c0_52, %c0_53] : memref<8x8x128xf32, #tpu.memory_space<vmem>>, vector<1x8x128xf32>
    %84 = vector.shape_cast %83 : vector<1x8x128xf32> to vector<8x128xf32>
    %c0_54 = arith.constant 0 : index
    %c0_55 = arith.constant 0 : index
    %85 = vector.load %arg3[%c0_54, %c0_55] : memref<128x128xf32, #tpu.memory_space<vmem>>, vector<128x128xf32>
    %cst_56 = arith.constant dense<0.000000e+00> : vector<8x128xf32>
    %86 = tpu.matmul %77, %85, %cst_56 {dimension_numbers = #tpu.dot_dimension_numbers<[1], [0], [0], [1], [0, 0, 1, 1], [], []>} : vector<8x128xf32>, vector<128x128xf32>, vector<8x128xf32> -> vector<8x128xf32>
    %87 = arith.addf %84, %86 : vector<8x128xf32>
    %88 = math.tanh %87 : vector<8x128xf32>
    %89 = arith.index_cast %c7_i32 : i32 to index
    %c0_57 = arith.constant 0 : index
    %c0_58 = arith.constant 0 : index
    %90 = vector.load %arg11[%89, %c0_57, %c0_58] : memref<8x8x128xf32, #tpu.memory_space<vmem>>, vector<1x8x128xf32>
    %91 = vector.shape_cast %90 : vector<1x8x128xf32> to vector<8x128xf32>
    %92 = vector.shape_cast %88 : vector<8x128xf32> to vector<1x8x128xf32>
    tpu.vector_store %arg11[%89, %c0_57, %c0_58], %92 {strides = array<i32>} : memref<8x8x128xf32, #tpu.memory_space<vmem>>, vector<1x8x128xf32>,
    %c8_i32 = arith.constant 8 : i32
    %c0_59 = arith.constant 0 : index
    %c0_60 = arith.constant 0 : index
    %c0_61 = arith.constant 0 : index
    %93 = vector.load %arg10[%c0_59, %c0_60, %c0_61] : memref<2x8x128xf32, #tpu.memory_space<vmem>>, vector<1x8x128xf32>
    %94 = vector.shape_cast %93 : vector<1x8x128xf32> to vector<8x128xf32>
    %95 = vector.shape_cast %88 : vector<8x128xf32> to vector<1x8x128xf32>
    tpu.vector_store %arg10[%c0_59, %c0_60, %c0_61], %95 {strides = array<i32>} : memref<2x8x128xf32, #tpu.memory_space<vmem>>, vector<1x8x128xf32>,
    %c0_62 = arith.constant 0 : index
    %c0_63 = arith.constant 0 : index
    %c0_64 = arith.constant 0 : index
    %96 = vector.load %arg11[%c0_62, %c0_63, %c0_64] : memref<8x8x128xf32, #tpu.memory_space<vmem>>, vector<8x8x128xf32>
    %97 = vector.shape_cast %96 : vector<8x8x128xf32> to vector<64x128xf32>
    %c0_65 = arith.constant 0 : index
    %c0_66 = arith.constant 0 : index
    %98 = vector.load %arg4[%c0_65, %c0_66] : memref<128x128xf32, #tpu.memory_space<vmem>>, vector<128x128xf32>
    %cst_67 = arith.constant dense<0.000000e+00> : vector<64x128xf32>
    %99 = tpu.matmul %97, %98, %cst_67 {dimension_numbers = #tpu.dot_dimension_numbers<[1], [0], [0], [1], [0, 0, 1, 1], [], []>} : vector<64x128xf32>, vector<128x128xf32>, vector<64x128xf32> -> vector<64x128xf32>
    %c0_68 = arith.constant 0 : index
    %c0_69 = arith.constant 0 : index
    %100 = vector.load %arg6[%c0_68, %c0_69] : memref<1x128xf32, #tpu.memory_space<vmem>>, vector<1x128xf32>
    %101 = vector.broadcast %100 : vector<1x128xf32> to vector<64x128xf32>
    %102 = arith.addf %99, %101 : vector<64x128xf32>
    %103 = vector.shape_cast %102 : vector<64x128xf32> to vector<8x8x128xf32>
    %c0_70 = arith.constant 0 : index
    %c0_71 = arith.constant 0 : index
    %c0_72 = arith.constant 0 : index
    %104 = vector.load %arg12[%c0_70, %c0_71, %c0_72] : memref<8x8x128xf32, #tpu.memory_space<vmem>>, vector<8x8x128xf32>
    tpu.vector_store %arg12[%c0_70, %c0_71, %c0_72], %103 {strides = array<i32>} : memref<8x8x128xf32, #tpu.memory_space<vmem>>, vector<8x8x128xf32>,
    %c1 = arith.constant 1 : index
    %c0_73 = arith.constant 0 : index
    %c0_74 = arith.constant 0 : index
    %105 = vector.load %arg10[%c1, %c0_73, %c0_74] : memref<2x8x128xf32, #tpu.memory_space<vmem>>, vector<1x8x128xf32>
    %106 = vector.shape_cast %105 : vector<1x8x128xf32> to vector<8x128xf32>
    %c0_i32_75 = arith.constant 0 : i32
    %107 = arith.index_cast %c0_i32_75 : i32 to index
    %c0_76 = arith.constant 0 : index
    %c0_77 = arith.constant 0 : index
    %108 = vector.load %arg12[%107, %c0_76, %c0_77] : memref<8x8x128xf32, #tpu.memory_space<vmem>>, vector<1x8x128xf32>
    %109 = vector.shape_cast %108 : vector<1x8x128xf32> to vector<8x128xf32>
    %c0_78 = arith.constant 0 : index
    %c0_79 = arith.constant 0 : index
    %110 = vector.load %arg5[%c0_78, %c0_79] : memref<128x128xf32, #tpu.memory_space<vmem>>, vector<128x128xf32>
    %cst_80 = arith.constant dense<0.000000e+00> : vector<8x128xf32>
    %111 = tpu.matmul %106, %110, %cst_80 {dimension_numbers = #tpu.dot_dimension_numbers<[1], [0], [0], [1], [0, 0, 1, 1], [], []>} : vector<8x128xf32>, vector<128x128xf32>, vector<8x128xf32> -> vector<8x128xf32>
    %112 = arith.addf %109, %111 : vector<8x128xf32>
    %113 = math.tanh %112 : vector<8x128xf32>
    %c1_i32_81 = arith.constant 1 : i32
    %114 = arith.index_cast %c1_i32_81 : i32 to index
    %c0_82 = arith.constant 0 : index
    %c0_83 = arith.constant 0 : index
    %115 = vector.load %arg12[%114, %c0_82, %c0_83] : memref<8x8x128xf32, #tpu.memory_space<vmem>>, vector<1x8x128xf32>
    %116 = vector.shape_cast %115 : vector<1x8x128xf32> to vector<8x128xf32>
    %c0_84 = arith.constant 0 : index
    %c0_85 = arith.constant 0 : index
    %117 = vector.load %arg5[%c0_84, %c0_85] : memref<128x128xf32, #tpu.memory_space<vmem>>, vector<128x128xf32>
    %cst_86 = arith.constant dense<0.000000e+00> : vector<8x128xf32>
    %118 = tpu.matmul %113, %117, %cst_86 {dimension_numbers = #tpu.dot_dimension_numbers<[1], [0], [0], [1], [0, 0, 1, 1], [], []>} : vector<8x128xf32>, vector<128x128xf32>, vector<8x128xf32> -> vector<8x128xf32>
    %119 = arith.addf %116, %118 : vector<8x128xf32>
    %120 = math.tanh %119 : vector<8x128xf32>
    %c2_i32_87 = arith.constant 2 : i32
    %121 = arith.index_cast %c2_i32_87 : i32 to index
    %c0_88 = arith.constant 0 : index
    %c0_89 = arith.constant 0 : index
    %122 = vector.load %arg12[%121, %c0_88, %c0_89] : memref<8x8x128xf32, #tpu.memory_space<vmem>>, vector<1x8x128xf32>
    %123 = vector.shape_cast %122 : vector<1x8x128xf32> to vector<8x128xf32>
    %c0_90 = arith.constant 0 : index
    %c0_91 = arith.constant 0 : index
    %124 = vector.load %arg5[%c0_90, %c0_91] : memref<128x128xf32, #tpu.memory_space<vmem>>, vector<128x128xf32>
    %cst_92 = arith.constant dense<0.000000e+00> : vector<8x128xf32>
    %125 = tpu.matmul %120, %124, %cst_92 {dimension_numbers = #tpu.dot_dimension_numbers<[1], [0], [0], [1], [0, 0, 1, 1], [], []>} : vector<8x128xf32>, vector<128x128xf32>, vector<8x128xf32> -> vector<8x128xf32>
    %126 = arith.addf %123, %125 : vector<8x128xf32>
    %127 = math.tanh %126 : vector<8x128xf32>
    %c3_i32_93 = arith.constant 3 : i32
    %128 = arith.index_cast %c3_i32_93 : i32 to index
    %c0_94 = arith.constant 0 : index
    %c0_95 = arith.constant 0 : index
    %129 = vector.load %arg12[%128, %c0_94, %c0_95] : memref<8x8x128xf32, #tpu.memory_space<vmem>>, vector<1x8x128xf32>
    %130 = vector.shape_cast %129 : vector<1x8x128xf32> to vector<8x128xf32>
    %c0_96 = arith.constant 0 : index
    %c0_97 = arith.constant 0 : index
    %131 = vector.load %arg5[%c0_96, %c0_97] : memref<128x128xf32, #tpu.memory_space<vmem>>, vector<128x128xf32>
    %cst_98 = arith.constant dense<0.000000e+00> : vector<8x128xf32>
    %132 = tpu.matmul %127, %131, %cst_98 {dimension_numbers = #tpu.dot_dimension_numbers<[1], [0], [0], [1], [0, 0, 1, 1], [], []>} : vector<8x128xf32>, vector<128x128xf32>, vector<8x128xf32> -> vector<8x128xf32>
    %133 = arith.addf %130, %132 : vector<8x128xf32>
    %134 = math.tanh %133 : vector<8x128xf32>
    %c4_i32_99 = arith.constant 4 : i32
    %135 = arith.index_cast %c4_i32_99 : i32 to index
    %c0_100 = arith.constant 0 : index
    %c0_101 = arith.constant 0 : index
    %136 = vector.load %arg12[%135, %c0_100, %c0_101] : memref<8x8x128xf32, #tpu.memory_space<vmem>>, vector<1x8x128xf32>
    %137 = vector.shape_cast %136 : vector<1x8x128xf32> to vector<8x128xf32>
    %c0_102 = arith.constant 0 : index
    %c0_103 = arith.constant 0 : index
    %138 = vector.load %arg5[%c0_102, %c0_103] : memref<128x128xf32, #tpu.memory_space<vmem>>, vector<128x128xf32>
    %cst_104 = arith.constant dense<0.000000e+00> : vector<8x128xf32>
    %139 = tpu.matmul %134, %138, %cst_104 {dimension_numbers = #tpu.dot_dimension_numbers<[1], [0], [0], [1], [0, 0, 1, 1], [], []>} : vector<8x128xf32>, vector<128x128xf32>, vector<8x128xf32> -> vector<8x128xf32>
    %140 = arith.addf %137, %139 : vector<8x128xf32>
    %141 = math.tanh %140 : vector<8x128xf32>
    %c5_i32_105 = arith.constant 5 : i32
    %142 = arith.index_cast %c5_i32_105 : i32 to index
    %c0_106 = arith.constant 0 : index
    %c0_107 = arith.constant 0 : index
    %143 = vector.load %arg12[%142, %c0_106, %c0_107] : memref<8x8x128xf32, #tpu.memory_space<vmem>>, vector<1x8x128xf32>
    %144 = vector.shape_cast %143 : vector<1x8x128xf32> to vector<8x128xf32>
    %c0_108 = arith.constant 0 : index
    %c0_109 = arith.constant 0 : index
    %145 = vector.load %arg5[%c0_108, %c0_109] : memref<128x128xf32, #tpu.memory_space<vmem>>, vector<128x128xf32>
    %cst_110 = arith.constant dense<0.000000e+00> : vector<8x128xf32>
    %146 = tpu.matmul %141, %145, %cst_110 {dimension_numbers = #tpu.dot_dimension_numbers<[1], [0], [0], [1], [0, 0, 1, 1], [], []>} : vector<8x128xf32>, vector<128x128xf32>, vector<8x128xf32> -> vector<8x128xf32>
    %147 = arith.addf %144, %146 : vector<8x128xf32>
    %148 = math.tanh %147 : vector<8x128xf32>
    %c6_i32_111 = arith.constant 6 : i32
    %149 = arith.index_cast %c6_i32_111 : i32 to index
    %c0_112 = arith.constant 0 : index
    %c0_113 = arith.constant 0 : index
    %150 = vector.load %arg12[%149, %c0_112, %c0_113] : memref<8x8x128xf32, #tpu.memory_space<vmem>>, vector<1x8x128xf32>
    %151 = vector.shape_cast %150 : vector<1x8x128xf32> to vector<8x128xf32>
    %c0_114 = arith.constant 0 : index
    %c0_115 = arith.constant 0 : index
    %152 = vector.load %arg5[%c0_114, %c0_115] : memref<128x128xf32, #tpu.memory_space<vmem>>, vector<128x128xf32>
    %cst_116 = arith.constant dense<0.000000e+00> : vector<8x128xf32>
    %153 = tpu.matmul %148, %152, %cst_116 {dimension_numbers = #tpu.dot_dimension_numbers<[1], [0], [0], [1], [0, 0, 1, 1], [], []>} : vector<8x128xf32>, vector<128x128xf32>, vector<8x128xf32> -> vector<8x128xf32>
    %154 = arith.addf %151, %153 : vector<8x128xf32>
    %155 = math.tanh %154 : vector<8x128xf32>
    %c7_i32_117 = arith.constant 7 : i32
    %156 = arith.index_cast %c7_i32_117 : i32 to index
    %c0_118 = arith.constant 0 : index
    %c0_119 = arith.constant 0 : index
    %157 = vector.load %arg12[%156, %c0_118, %c0_119] : memref<8x8x128xf32, #tpu.memory_space<vmem>>, vector<1x8x128xf32>
    %158 = vector.shape_cast %157 : vector<1x8x128xf32> to vector<8x128xf32>
    %c0_120 = arith.constant 0 : index
    %c0_121 = arith.constant 0 : index
    %159 = vector.load %arg5[%c0_120, %c0_121] : memref<128x128xf32, #tpu.memory_space<vmem>>, vector<128x128xf32>
    %cst_122 = arith.constant dense<0.000000e+00> : vector<8x128xf32>
    %160 = tpu.matmul %155, %159, %cst_122 {dimension_numbers = #tpu.dot_dimension_numbers<[1], [0], [0], [1], [0, 0, 1, 1], [], []>} : vector<8x128xf32>, vector<128x128xf32>, vector<8x128xf32> -> vector<8x128xf32>
    %161 = arith.addf %158, %160 : vector<8x128xf32>
    %162 = math.tanh %161 : vector<8x128xf32>
    %c8_i32_123 = arith.constant 8 : i32
    %c1_124 = arith.constant 1 : index
    %c0_125 = arith.constant 0 : index
    %c0_126 = arith.constant 0 : index
    %163 = vector.load %arg10[%c1_124, %c0_125, %c0_126] : memref<2x8x128xf32, #tpu.memory_space<vmem>>, vector<1x8x128xf32>
    %164 = vector.shape_cast %163 : vector<1x8x128xf32> to vector<8x128xf32>
    %165 = vector.shape_cast %162 : vector<8x128xf32> to vector<1x8x128xf32>
    tpu.vector_store %arg10[%c1_124, %c0_125, %c0_126], %165 {strides = array<i32>} : memref<2x8x128xf32, #tpu.memory_space<vmem>>, vector<1x8x128xf32>,
    %c0_i32_127 = arith.constant 0 : i32
    %166 = arith.cmpi eq, %arg1, %c0_i32_127 : i32
    %167 = arith.extui %166 : i1 to i32
    %c0_i32_128 = arith.constant 0 : i32
    %168 = arith.cmpi ne, %167, %c0_i32_128 : i32
    scf.if %168 {
      %c0_129 = arith.constant 0 : index
      %c0_130 = arith.constant 0 : index
      %169 = vector.load %arg7[%c0_129, %c0_130] : memref<128x128xf32, #tpu.memory_space<vmem>>, vector<128x128xf32>
      %cst_131 = arith.constant dense<0.000000e+00> : vector<8x128xf32>
      %170 = tpu.matmul %162, %169, %cst_131 {dimension_numbers = #tpu.dot_dimension_numbers<[1], [0], [0], [1], [0, 0, 1, 1], [], []>} : vector<8x128xf32>, vector<128x128xf32>, vector<8x128xf32> -> vector<8x128xf32>
      %c0_132 = arith.constant 0 : index
      %c0_133 = arith.constant 0 : index
      %171 = vector.load %arg8[%c0_132, %c0_133] : memref<1x128xf32, #tpu.memory_space<vmem>>, vector<1x128xf32>
      %172 = vector.broadcast %171 : vector<1x128xf32> to vector<8x128xf32>
      %173 = arith.addf %170, %172 : vector<8x128xf32>
      %c0_134 = arith.constant 0 : index
      %c0_135 = arith.constant 0 : index
      %174 = vector.load %arg9[%c0_134, %c0_135] : memref<8x128xf32, #tpu.memory_space<vmem>>, vector<8x128xf32>
      tpu.vector_store %arg9[%c0_134, %c0_135], %173 {strides = array<i32>} : memref<8x128xf32, #tpu.memory_space<vmem>>, vector<8x128xf32>,
    } else {
    }
    return
  }
  func.func @transform_0(%arg0: i32, %arg1: i32) -> (i32, i32, i32) {
    %c0_i32 = arith.constant 0 : i32
    %c0_i32_0 = arith.constant 0 : i32
    return %arg1, %arg0, %c0_i32 : i32, i32, i32
  }
  func.func @transform_1(%arg0: i32, %arg1: i32) -> (i32, i32) {
    %c0_i32 = arith.constant 0 : i32
    %c0_i32_0 = arith.constant 0 : i32
    %c0_i32_1 = arith.constant 0 : i32
    return %c0_i32, %c0_i32_0 : i32, i32
  }
  func.func @transform_2(%arg0: i32, %arg1: i32) -> (i32, i32) {
    %c0_i32 = arith.constant 0 : i32
    %c0_i32_0 = arith.constant 0 : i32
    %c0_i32_1 = arith.constant 0 : i32
    return %c0_i32, %c0_i32_0 : i32, i32
  }
  func.func @transform_3(%arg0: i32, %arg1: i32) -> (i32, i32) {
    %c0_i32 = arith.constant 0 : i32
    %c0_i32_0 = arith.constant 0 : i32
    %c0_i32_1 = arith.constant 0 : i32
    return %c0_i32, %c0_i32_0 : i32, i32
  }
  func.func @transform_4(%arg0: i32, %arg1: i32) -> (i32, i32) {
    %c0_i32 = arith.constant 0 : i32
    %c0_i32_0 = arith.constant 0 : i32
    %c0_i32_1 = arith.constant 0 : i32
    return %c0_i32, %c0_i32_0 : i32, i32
  }
  func.func @transform_5(%arg0: i32, %arg1: i32) -> (i32, i32) {
    %c0_i32 = arith.constant 0 : i32
    %c0_i32_0 = arith.constant 0 : i32
    %c0_i32_1 = arith.constant 0 : i32
    return %c0_i32, %c0_i32_0 : i32, i32
  }
  func.func @transform_6(%arg0: i32, %arg1: i32) -> (i32, i32) {
    %c0_i32 = arith.constant 0 : i32
    %c0_i32_0 = arith.constant 0 : i32
    %c0_i32_1 = arith.constant 0 : i32
    return %c0_i32, %c0_i32_0 : i32, i32
  }
  func.func @transform_7(%arg0: i32, %arg1: i32) -> (i32, i32) {
    %c0_i32 = arith.constant 0 : i32
    %c0_i32_0 = arith.constant 0 : i32
    return %arg0, %c0_i32 : i32, i32
  }
}

</mosaic_0001>

<bundles_post_ra>
// kernel: rnn_forward.1
= control target key start
LH: loop header
LB: loop body
LE: loop exit
PB: predicated region body
PF: predicated region fallthrough
CT: control target
= control target key end

     0   :  { %v2618_v0 = vmov 0.0   ;;  %vm2619_vm0 = vmmov 0   ;;  %s3558_s1 = inlined_call_operand.vmem [shape: f32[128,128], index: 1, kind: input, shape index: {}]   ;;  %s3559_s0 = inlined_call_operand.vmem [shape: f32[8,8,128], index: 0, kind: input, shape index: {}]   ;;  %s3560_s2 = inlined_call_operand.vmem [shape: f32[128,128], index: 2, kind: input, shape index: {}]   ;;  %s3561_s3 = inlined_call_operand.vmem [shape: f32[128,128], index: 3, kind: input, shape index: {}]   ;;  %s3562_s4 = inlined_call_operand.vmem [shape: f32[1,128], index: 4, kind: input, shape index: {}]   ;;  %s3563_s5 = inlined_call_operand.vmem [shape: f32[128,128], index: 5, kind: input, shape index: {}]   ;;  %s3564_s6 = inlined_call_operand.vmem [shape: f32[1,128], index: 6, kind: input, shape index: {}]   ;;  %s3565_s7 = inlined_call_operand.vmem [shape: f32[8,128], index: 7, kind: output, shape index: {}]  }
   0x1   :  { %1945 = vmatprep.subr.mxu0 %v2618_v0  ;;  %v2664_v1 = vld [vmem:[%s3558_s1 + $0x78] sm:$0xff]  ;;  %v2669_v2 = vld [vmem:[%s3558_s1 + $0x70] sm:$0xff]  ;;  %1977 = vmatprep.mubr.msk.f32.mxu0 %vm2619_vm0, %v2618_v0  ;;  %v2679_v3 = vld [vmem:[%s3558_s1 + $0x68] sm:$0xff] }
   0x2   :  { %1946 = vmatpush3.msra.mxu0 %v2664_v1  ;;  %1980 = vmatprep.subr.mxu1 %v2618_v0  ;;  %v2688_v4 = vld [vmem:[%s3558_s1 + $0x60] sm:$0xff]  ;;  %v2697_v5 = vld [vmem:[%s3558_s1 + $0x58] sm:$0xff]  ;;  %v2706_v6 = vld [vmem:[%s3558_s1 + $0x50] sm:$0xff] }
   0x3   :  { %1947 = vmatprep.subr.mxu0 %v2618_v0  ;;  %1981 = vmatpush3.msra.mxu1 %v2664_v1  ;;  %v2715_v7 = vld [vmem:[%s3558_s1 + $0x48] sm:$0xff]  ;;  %v2724_v8 = vld [vmem:[%s3558_s1 + $0x40] sm:$0xff]  ;;  %v2733_v9 = vld [vmem:[%s3558_s1 + $0x38] sm:$0xff] }
   0x4   :  { %1948 = vmatpush3.msra.mxu0 %v2669_v2  ;;  %1982 = vmatprep.subr.mxu1 %v2618_v0  ;;  %v2742_v10 = vld [vmem:[%s3558_s1 + $0x30] sm:$0xff]  ;;  %v2751_v11 = vld [vmem:[%s3558_s1 + $0x28] sm:$0xff]  ;;  %v2760_v12 = vld [vmem:[%s3558_s1 + $0x20] sm:$0xff] }
   0x5   :  { %1949 = vmatprep.subr.mxu0 %v2618_v0  ;;  %1983 = vmatpush3.msra.mxu1 %v2669_v2  ;;  %v2769_v13 = vld [vmem:[%s3558_s1 + $0x18] sm:$0xff]  ;;  %v2778_v14 = vld [vmem:[%s3558_s1 + $0x10] sm:$0xff]  ;;  %v2787_v15 = vld [vmem:[%s3558_s1 + $0x8] sm:$0xff] }
   0x6   :  { %1950 = vmatpush3.msra.mxu0 %v2679_v3  ;;  %1984 = vmatprep.subr.mxu1 %v2618_v0  ;;  %v2796_v16 = vld [vmem:[%s3558_s1] sm:$0xff]  ;;  %v1623_v22 = vld [vmem:[%s3559_s0 + $0x8] sm:$0xff]  ;;  %v1624_v27 = vld [vmem:[%s3559_s0 + $0x10] sm:$0xff] }
   0x7   :  { %1951 = vmatprep.subr.mxu0 %v2618_v0  ;;  %1985 = vmatpush3.msra.mxu1 %v2679_v3  ;;  %v33_v17 = vld [vmem:[%s3559_s0] sm:$0xff]  ;;  %v1625_v32 = vld [vmem:[%s3559_s0 + $0x18] sm:$0xff]  ;;  %v1627_v43 = vld [vmem:[%s3559_s0 + $0x28] sm:$0xff] }
   0x8   :  { %1952 = vmatpush3.msra.mxu0 %v2688_v4  ;;  %1986 = vmatprep.subr.mxu1 %v2618_v0  ;;  %v1626_v37 = vld [vmem:[%s3559_s0 + $0x20] sm:$0xff]  ;;  %v791_v42 = vld [vmem:[%s3560_s2 + $0x78] sm:$0xff]  ;;  %v790_v48 = vld [vmem:[%s3560_s2 + $0x70] sm:$0xff] }
   0x9   :  { %1953 = vmatprep.subr.mxu0 %v2618_v0  ;;  %1987 = vmatpush3.msra.mxu1 %v2688_v4  ;;  %v789_v49 = vld [vmem:[%s3560_s2 + $0x68] sm:$0xff]  ;;  %v788_v50 = vld [vmem:[%s3560_s2 + $0x60] sm:$0xff]  ;;  %v787_v51 = vld [vmem:[%s3560_s2 + $0x58] sm:$0xff] }
   0xa   :  { %1954 = vmatpush3.msra.mxu0 %v2697_v5  ;;  %1988 = vmatprep.subr.mxu1 %v2618_v0  ;;  %v786_v52 = vld [vmem:[%s3560_s2 + $0x50] sm:$0xff]  ;;  %v785_v53 = vld [vmem:[%s3560_s2 + $0x48] sm:$0xff]  ;;  %v784_v54 = vld [vmem:[%s3560_s2 + $0x40] sm:$0xff] }
   0xb   :  { %1955 = vmatprep.subr.mxu0 %v2618_v0  ;;  %1989 = vmatpush3.msra.mxu1 %v2697_v5  ;;  %v783_v55 = vld [vmem:[%s3560_s2 + $0x38] sm:$0xff]  ;;  %v782_v56 = vld [vmem:[%s3560_s2 + $0x30] sm:$0xff]  ;;  %v781_v57 = vld [vmem:[%s3560_s2 + $0x28] sm:$0xff] }
   0xc   :  { %1956 = vmatpush3.msra.mxu0 %v2706_v6  ;;  %1990 = vmatprep.subr.mxu1 %v2618_v0  ;;  %v780_v58 = vld [vmem:[%s3560_s2 + $0x20] sm:$0xff]  ;;  %v779_v59 = vld [vmem:[%s3560_s2 + $0x18] sm:$0xff]  ;;  %v778_v60 = vld [vmem:[%s3560_s2 + $0x10] sm:$0xff] }
   0xd   :  { %1957 = vmatprep.subr.mxu0 %v2618_v0  ;;  %1991 = vmatpush3.msra.mxu1 %v2706_v6  ;;  %v777_v61 = vld [vmem:[%s3560_s2 + $0x8] sm:$0xff]  ;;  %v776_v62 = vld [vmem:[%s3560_s2] sm:$0xff]  ;;  %v3104_v63 = vld [vmem:[%s3561_s3 + $0x78] sm:$0xff] }
   0xe   :  { %1958 = vmatpush3.msra.mxu0 %v2715_v7  ;;  %1992 = vmatprep.subr.mxu1 %v2618_v0 }
   0xf   :  { %1959 = vmatprep.subr.mxu0 %v2618_v0  ;;  %1993 = vmatpush3.msra.mxu1 %v2715_v7 }
  0x10   :  { %1960 = vmatpush3.msra.mxu0 %v2724_v8  ;;  %1994 = vmatprep.subr.mxu1 %v2618_v0 }
  0x11   :  { %1961 = vmatprep.subr.mxu0 %v2618_v0  ;;  %1995 = vmatpush3.msra.mxu1 %v2724_v8 }
  0x12   :  { %1962 = vmatpush3.msra.mxu0 %v2733_v9  ;;  %1996 = vmatprep.subr.mxu1 %v2618_v0 }
  0x13   :  { %1963 = vmatprep.subr.mxu0 %v2618_v0  ;;  %1997 = vmatpush3.msra.mxu1 %v2733_v9 }
  0x14   :  { %1964 = vmatpush3.msra.mxu0 %v2742_v10  ;;  %1998 = vmatprep.subr.mxu1 %v2618_v0 }
  0x15   :  { %1965 = vmatprep.subr.mxu0 %v2618_v0  ;;  %1999 = vmatpush3.msra.mxu1 %v2742_v10 }
  0x16   :  { %1966 = vmatpush3.msra.mxu0 %v2751_v11  ;;  %2000 = vmatprep.subr.mxu1 %v2618_v0 }
  0x17   :  { %1967 = vmatprep.subr.mxu0 %v2618_v0  ;;  %2001 = vmatpush3.msra.mxu1 %v2751_v11 }
  0x18   :  { %1968 = vmatpush3.msra.mxu0 %v2760_v12  ;;  %2002 = vmatprep.subr.mxu1 %v2618_v0 }
  0x19   :  { %1969 = vmatprep.subr.mxu0 %v2618_v0  ;;  %2003 = vmatpush3.msra.mxu1 %v2760_v12 }
  0x1a   :  { %1970 = vmatpush3.msra.mxu0 %v2769_v13  ;;  %2004 = vmatprep.subr.mxu1 %v2618_v0 }
  0x1b   :  { %1971 = vmatprep.subr.mxu0 %v2618_v0  ;;  %2005 = vmatpush3.msra.mxu1 %v2769_v13 }
  0x1c   :  { %1972 = vmatpush3.msra.mxu0 %v2778_v14  ;;  %2006 = vmatprep.subr.mxu1 %v2618_v0 }
  0x1d   :  { %1973 = vmatprep.subr.mxu0 %v2618_v0  ;;  %2007 = vmatpush3.msra.mxu1 %v2778_v14 }
  0x1e   :  { %1974 = vmatpush3.msra.mxu0 %v2787_v15  ;;  %2008 = vmatprep.subr.mxu1 %v2618_v0 }
  0x1f   :  { %1975 = vmatprep.subr.mxu0 %v2618_v0  ;;  %2009 = vmatpush3.msra.mxu1 %v2787_v15 }
  0x20   :  { %1976 = vmatpush3.msra.mxu0 %v2796_v16  ;;  %2010 = vmatprep.subr.mxu1 %v2618_v0 }
  0x21   :  { %1978 = vmatmul.mubr.f32.vlgmr.msra.gmra.mxu0 %v2618_v0  ;;  %2011 = vmatpush3.msra.mxu1 %v2796_v16 }
  0x22   :  { %2012 = vmatprep.mubr.msk.f32.mxu1 %vm2619_vm0, %v2618_v0  ;;  %2015 = vmatprep.subr.mxu0 %v2618_v0 }
  0x23   :  { %2016 = vmatpush3.msra.mxu0 %v2664_v1  ;;  %2047 = vmatprep.mubr.msk.f32.mxu0 %vm2619_vm0, %v2618_v0 }
  0x24   :  { %2017 = vmatprep.subr.mxu0 %v2618_v0  ;;  %2050 = vmatprep.subr.mxu1 %v2618_v0 }
  0x25   :  { %2018 = vmatpush3.msra.mxu0 %v2669_v2 }
  0x26   :  { %2019 = vmatprep.subr.mxu0 %v2618_v0 }
  0x27   :  { %2020 = vmatpush3.msra.mxu0 %v2679_v3 }
  0x28   :  { %2021 = vmatprep.subr.mxu0 %v2618_v0 }
  0x29   :  { %2022 = vmatpush3.msra.mxu0 %v2688_v4 }
  0x2a   :  { %2023 = vmatprep.subr.mxu0 %v2618_v0 }
  0x2b   :  { %2024 = vmatpush3.msra.mxu0 %v2697_v5 }
  0x2c   :  { %2025 = vmatprep.subr.mxu0 %v2618_v0 }
  0x2d   :  { %2026 = vmatpush3.msra.mxu0 %v2706_v6 }
  0x2e   :  { %2027 = vmatprep.subr.mxu0 %v2618_v0 }
  0x2f   :  { %2028 = vmatpush3.msra.mxu0 %v2715_v7 }
  0x30   :  { %2029 = vmatprep.subr.mxu0 %v2618_v0 }
  0x31   :  { %2030 = vmatpush3.msra.mxu0 %v2724_v8 }
  0x32   :  { %2031 = vmatprep.subr.mxu0 %v2618_v0 }
  0x33   :  { %2032 = vmatpush3.msra.mxu0 %v2733_v9 }
  0x34   :  { %2033 = vmatprep.subr.mxu0 %v2618_v0 }
  0x35   :  { %2034 = vmatpush3.msra.mxu0 %v2742_v10 }
  0x36   :  { %2035 = vmatprep.subr.mxu0 %v2618_v0 }
  0x37   :  { %2036 = vmatpush3.msra.mxu0 %v2751_v11 }
  0x38   :  { %2037 = vmatprep.subr.mxu0 %v2618_v0 }
  0x39   :  { %2038 = vmatpush3.msra.mxu0 %v2760_v12 }
  0x3a   :  { %2039 = vmatprep.subr.mxu0 %v2618_v0 }
  0x3b   :  { %2040 = vmatpush3.msra.mxu0 %v2769_v13 }
  0x3c   :  { %2041 = vmatprep.subr.mxu0 %v2618_v0 }
  0x3d   :  { %2042 = vmatpush3.msra.mxu0 %v2778_v14 }
  0x3e   :  { %2043 = vmatprep.subr.mxu0 %v2618_v0 }
  0x3f   :  { %2044 = vmatpush3.msra.mxu0 %v2787_v15 }
  0x40   :  { %2045 = vmatprep.subr.mxu0 %v2618_v0 }
  0x41   :  { %2046 = vmatpush3.msra.mxu0 %v2796_v16 }
  0x42   :  { %2085 = vmatprep.subr.mxu0 %v2618_v0 }
  0xe1   :  { %v116_v18 = vpop.f32.mrf.mxu0 }
  0xe2   :  { %v120_v19 = vadd.f32 %v116_v18, %v33_v17 }
  0xe3   :  { %v1979_v20 = vpop.f32.mrf.mxu0 }
  0xe4   :  { %2586 = vtanh.f32 %v120_v19 }
  0xf1   :  { %v2848_v21 = vpop.eup %2586 }
  0xf2   :  { %2013 = vmatmul.mubr.f32.vlgmr.msra.gmra.mxu1 %v2848_v21 }
  0xf3   :  { %2051 = vmatpush3.msra.mxu1 %v2664_v1  ;;  %2082 = vmatprep.mubr.msk.f32.mxu1 %vm2619_vm0, %v2618_v0 }
  0xf4   :  { %2052 = vmatprep.subr.mxu1 %v2618_v0 }
  0xf5   :  { %2053 = vmatpush3.msra.mxu1 %v2669_v2 }
  0xf6   :  { %2054 = vmatprep.subr.mxu1 %v2618_v0 }
  0xf7   :  { %2055 = vmatpush3.msra.mxu1 %v2679_v3 }
  0xf8   :  { %2056 = vmatprep.subr.mxu1 %v2618_v0 }
  0xf9   :  { %2057 = vmatpush3.msra.mxu1 %v2688_v4 }
  0xfa   :  { %2058 = vmatprep.subr.mxu1 %v2618_v0 }
  0xfb   :  { %2059 = vmatpush3.msra.mxu1 %v2697_v5 }
  0xfc   :  { %2060 = vmatprep.subr.mxu1 %v2618_v0 }
  0xfd   :  { %2061 = vmatpush3.msra.mxu1 %v2706_v6 }
  0xfe   :  { %2062 = vmatprep.subr.mxu1 %v2618_v0 }
  0xff   :  { %2063 = vmatpush3.msra.mxu1 %v2715_v7 }
 0x100   :  { %2064 = vmatprep.subr.mxu1 %v2618_v0 }
 0x101   :  { %2065 = vmatpush3.msra.mxu1 %v2724_v8 }
 0x102   :  { %2066 = vmatprep.subr.mxu1 %v2618_v0 }
 0x103   :  { %2067 = vmatpush3.msra.mxu1 %v2733_v9 }
 0x104   :  { %2068 = vmatprep.subr.mxu1 %v2618_v0 }
 0x105   :  { %2069 = vmatpush3.msra.mxu1 %v2742_v10 }
 0x106   :  { %2070 = vmatprep.subr.mxu1 %v2618_v0 }
 0x107   :  { %2071 = vmatpush3.msra.mxu1 %v2751_v11 }
 0x108   :  { %2072 = vmatprep.subr.mxu1 %v2618_v0 }
 0x109   :  { %2073 = vmatpush3.msra.mxu1 %v2760_v12 }
 0x10a   :  { %2074 = vmatprep.subr.mxu1 %v2618_v0 }
 0x10b   :  { %2075 = vmatpush3.msra.mxu1 %v2769_v13 }
 0x10c   :  { %2076 = vmatprep.subr.mxu1 %v2618_v0 }
 0x10d   :  { %2077 = vmatpush3.msra.mxu1 %v2778_v14 }
 0x10e   :  { %2078 = vmatprep.subr.mxu1 %v2618_v0 }
 0x10f   :  { %2079 = vmatpush3.msra.mxu1 %v2787_v15 }
 0x110   :  { %2080 = vmatprep.subr.mxu1 %v2618_v0 }
 0x111   :  { %2081 = vmatpush3.msra.mxu1 %v2796_v16 }
 0x112   :  { %2120 = vmatprep.subr.mxu1 %v2618_v0 }
 0x1b2   :  { %v207_v23 = vpop.f32.mrf.mxu1 }
 0x1b3   :  { %v211_v24 = vadd.f32 %v1623_v22, %v207_v23 }
 0x1b4   :  { %v2014_v25 = vpop.f32.mrf.mxu1 }
 0x1b5   :  { %2588 = vtanh.f32 %v211_v24 }
 0x1c2   :  { %v2888_v26 = vpop.eup %2588 }
 0x1c3   :  { %2048 = vmatmul.mubr.f32.vlgmr.msra.gmra.mxu0 %v2888_v26 }
 0x1c4   :  { %2086 = vmatpush3.msra.mxu0 %v2664_v1  ;;  %2117 = vmatprep.mubr.msk.f32.mxu0 %vm2619_vm0, %v2618_v0 }
 0x1c5   :  { %2087 = vmatprep.subr.mxu0 %v2618_v0 }
 0x1c6   :  { %2088 = vmatpush3.msra.mxu0 %v2669_v2 }
 0x1c7   :  { %2089 = vmatprep.subr.mxu0 %v2618_v0 }
 0x1c8   :  { %2090 = vmatpush3.msra.mxu0 %v2679_v3 }
 0x1c9   :  { %2091 = vmatprep.subr.mxu0 %v2618_v0 }
 0x1ca   :  { %2092 = vmatpush3.msra.mxu0 %v2688_v4 }
 0x1cb   :  { %2093 = vmatprep.subr.mxu0 %v2618_v0 }
 0x1cc   :  { %2094 = vmatpush3.msra.mxu0 %v2697_v5 }
 0x1cd   :  { %2095 = vmatprep.subr.mxu0 %v2618_v0 }
 0x1ce   :  { %2096 = vmatpush3.msra.mxu0 %v2706_v6 }
 0x1cf   :  { %2097 = vmatprep.subr.mxu0 %v2618_v0 }
 0x1d0   :  { %2098 = vmatpush3.msra.mxu0 %v2715_v7 }
 0x1d1   :  { %2099 = vmatprep.subr.mxu0 %v2618_v0 }
 0x1d2   :  { %2100 = vmatpush3.msra.mxu0 %v2724_v8 }
 0x1d3   :  { %2101 = vmatprep.subr.mxu0 %v2618_v0 }
 0x1d4   :  { %2102 = vmatpush3.msra.mxu0 %v2733_v9 }
 0x1d5   :  { %2103 = vmatprep.subr.mxu0 %v2618_v0 }
 0x1d6   :  { %2104 = vmatpush3.msra.mxu0 %v2742_v10 }
 0x1d7   :  { %2105 = vmatprep.subr.mxu0 %v2618_v0 }
 0x1d8   :  { %2106 = vmatpush3.msra.mxu0 %v2751_v11 }
 0x1d9   :  { %2107 = vmatprep.subr.mxu0 %v2618_v0 }
 0x1da   :  { %2108 = vmatpush3.msra.mxu0 %v2760_v12 }
 0x1db   :  { %2109 = vmatprep.subr.mxu0 %v2618_v0 }
 0x1dc   :  { %2110 = vmatpush3.msra.mxu0 %v2769_v13 }
 0x1dd   :  { %2111 = vmatprep.subr.mxu0 %v2618_v0 }
 0x1de   :  { %2112 = vmatpush3.msra.mxu0 %v2778_v14 }
 0x1df   :  { %2113 = vmatprep.subr.mxu0 %v2618_v0 }
 0x1e0   :  { %2114 = vmatpush3.msra.mxu0 %v2787_v15 }
 0x1e1   :  { %2115 = vmatprep.subr.mxu0 %v2618_v0 }
 0x1e2   :  { %2116 = vmatpush3.msra.mxu0 %v2796_v16 }
 0x1e3   :  { %2155 = vmatprep.subr.mxu0 %v2618_v0 }
 0x283   :  { %v299_v28 = vpop.f32.mrf.mxu0 }
 0x284   :  { %v303_v29 = vadd.f32 %v1624_v27, %v299_v28  ;;  %v3293_v28 = vld [vmem:[%s3562_s4] ss:$0 sm:$0xff] }
 0x285   :  { %v2049_v30 = vpop.f32.mrf.mxu0 }
 0x286   :  { %2590 = vtanh.f32 %v303_v29 }
 0x293   :  { %v2928_v31 = vpop.eup %2590 }
 0x294   :  { %2083 = vmatmul.mubr.f32.vlgmr.msra.gmra.mxu1 %v2928_v31 }
 0x295   :  { %2121 = vmatpush3.msra.mxu1 %v2664_v1  ;;  %2152 = vmatprep.mubr.msk.f32.mxu1 %vm2619_vm0, %v2618_v0 }
 0x296   :  { %2122 = vmatprep.subr.mxu1 %v2618_v0 }
 0x297   :  { %2123 = vmatpush3.msra.mxu1 %v2669_v2 }
 0x298   :  { %2124 = vmatprep.subr.mxu1 %v2618_v0 }
 0x299   :  { %2125 = vmatpush3.msra.mxu1 %v2679_v3 }
 0x29a   :  { %2126 = vmatprep.subr.mxu1 %v2618_v0 }
 0x29b   :  { %2127 = vmatpush3.msra.mxu1 %v2688_v4 }
 0x29c   :  { %2128 = vmatprep.subr.mxu1 %v2618_v0 }
 0x29d   :  { %2129 = vmatpush3.msra.mxu1 %v2697_v5 }
 0x29e   :  { %2130 = vmatprep.subr.mxu1 %v2618_v0 }
 0x29f   :  { %2131 = vmatpush3.msra.mxu1 %v2706_v6 }
 0x2a0   :  { %2132 = vmatprep.subr.mxu1 %v2618_v0 }
 0x2a1   :  { %2133 = vmatpush3.msra.mxu1 %v2715_v7 }
 0x2a2   :  { %2134 = vmatprep.subr.mxu1 %v2618_v0 }
 0x2a3   :  { %2135 = vmatpush3.msra.mxu1 %v2724_v8 }
 0x2a4   :  { %2136 = vmatprep.subr.mxu1 %v2618_v0 }
 0x2a5   :  { %2137 = vmatpush3.msra.mxu1 %v2733_v9 }
 0x2a6   :  { %2138 = vmatprep.subr.mxu1 %v2618_v0 }
 0x2a7   :  { %2139 = vmatpush3.msra.mxu1 %v2742_v10 }
 0x2a8   :  { %2140 = vmatprep.subr.mxu1 %v2618_v0 }
 0x2a9   :  { %2141 = vmatpush3.msra.mxu1 %v2751_v11 }
 0x2aa   :  { %2142 = vmatprep.subr.mxu1 %v2618_v0 }
 0x2ab   :  { %2143 = vmatpush3.msra.mxu1 %v2760_v12 }
 0x2ac   :  { %2144 = vmatprep.subr.mxu1 %v2618_v0 }
 0x2ad   :  { %2145 = vmatpush3.msra.mxu1 %v2769_v13 }
 0x2ae   :  { %2146 = vmatprep.subr.mxu1 %v2618_v0 }
 0x2af   :  { %2147 = vmatpush3.msra.mxu1 %v2778_v14 }
 0x2b0   :  { %2148 = vmatprep.subr.mxu1 %v2618_v0 }
 0x2b1   :  { %2149 = vmatpush3.msra.mxu1 %v2787_v15 }
 0x2b2   :  { %2150 = vmatprep.subr.mxu1 %v2618_v0 }
 0x2b3   :  { %2151 = vmatpush3.msra.mxu1 %v2796_v16 }
 0x2b4   :  { %2190 = vmatprep.subr.mxu1 %v2618_v0 }
 0x354   :  { %v391_v33 = vpop.f32.mrf.mxu1 }
 0x355   :  { %v395_v34 = vadd.f32 %v1625_v32, %v391_v33 }
 0x356   :  { %v2084_v35 = vpop.f32.mrf.mxu1 }
 0x357   :  { %2592 = vtanh.f32 %v395_v34 }
 0x364   :  { %v2968_v36 = vpop.eup %2592 }
 0x365   :  { %2118 = vmatmul.mubr.f32.vlgmr.msra.gmra.mxu0 %v2968_v36 }
 0x366   :  { %2156 = vmatpush3.msra.mxu0 %v2664_v1  ;;  %2187 = vmatprep.mubr.msk.f32.mxu0 %vm2619_vm0, %v2618_v0 }
 0x367   :  { %2157 = vmatprep.subr.mxu0 %v2618_v0 }
 0x368   :  { %2158 = vmatpush3.msra.mxu0 %v2669_v2 }
 0x369   :  { %2159 = vmatprep.subr.mxu0 %v2618_v0 }
 0x36a   :  { %2160 = vmatpush3.msra.mxu0 %v2679_v3 }
 0x36b   :  { %2161 = vmatprep.subr.mxu0 %v2618_v0 }
 0x36c   :  { %2162 = vmatpush3.msra.mxu0 %v2688_v4 }
 0x36d   :  { %2163 = vmatprep.subr.mxu0 %v2618_v0 }
 0x36e   :  { %2164 = vmatpush3.msra.mxu0 %v2697_v5 }
 0x36f   :  { %2165 = vmatprep.subr.mxu0 %v2618_v0 }
 0x370   :  { %2166 = vmatpush3.msra.mxu0 %v2706_v6 }
 0x371   :  { %2167 = vmatprep.subr.mxu0 %v2618_v0 }
 0x372   :  { %2168 = vmatpush3.msra.mxu0 %v2715_v7 }
 0x373   :  { %2169 = vmatprep.subr.mxu0 %v2618_v0 }
 0x374   :  { %2170 = vmatpush3.msra.mxu0 %v2724_v8 }
 0x375   :  { %2171 = vmatprep.subr.mxu0 %v2618_v0 }
 0x376   :  { %2172 = vmatpush3.msra.mxu0 %v2733_v9 }
 0x377   :  { %2173 = vmatprep.subr.mxu0 %v2618_v0 }
 0x378   :  { %2174 = vmatpush3.msra.mxu0 %v2742_v10 }
 0x379   :  { %2175 = vmatprep.subr.mxu0 %v2618_v0 }
 0x37a   :  { %2176 = vmatpush3.msra.mxu0 %v2751_v11 }
 0x37b   :  { %2177 = vmatprep.subr.mxu0 %v2618_v0 }
 0x37c   :  { %2178 = vmatpush3.msra.mxu0 %v2760_v12 }
 0x37d   :  { %2179 = vmatprep.subr.mxu0 %v2618_v0 }
 0x37e   :  { %2180 = vmatpush3.msra.mxu0 %v2769_v13 }
 0x37f   :  { %2181 = vmatprep.subr.mxu0 %v2618_v0 }
 0x380   :  { %2182 = vmatpush3.msra.mxu0 %v2778_v14 }
 0x381   :  { %2183 = vmatprep.subr.mxu0 %v2618_v0 }
 0x382   :  { %2184 = vmatpush3.msra.mxu0 %v2787_v15 }
 0x383   :  { %2185 = vmatprep.subr.mxu0 %v2618_v0 }
 0x384   :  { %2186 = vmatpush3.msra.mxu0 %v2796_v16 }
 0x385   :  { %2225 = vmatprep.subr.mxu0 %v791_v42 }
 0x425   :  { %v483_v38 = vpop.f32.mrf.mxu0 }
 0x426   :  { %v487_v39 = vadd.f32 %v1626_v37, %v483_v38 }
 0x427   :  { %v2119_v40 = vpop.f32.mrf.mxu0 }
 0x428   :  { %2594 = vtanh.f32 %v487_v39 }
 0x435   :  { %v3007_v41 = vpop.eup %2594 }
 0x436   :  { %2153 = vmatmul.mubr.f32.vlgmr.msra.gmra.mxu1 %v3007_v41 }
 0x437   :  { %2191 = vmatpush3.msra.mxu1 %v2664_v1  ;;  %2222 = vmatprep.mubr.msk.f32.mxu1 %vm2619_vm0, %v2618_v0  ;;  %v3110_v1 = vld [vmem:[%s3561_s3 + $0x70] sm:$0xff] }
 0x438   :  { %2192 = vmatprep.subr.mxu1 %v2618_v0 }
 0x439   :  { %2193 = vmatpush3.msra.mxu1 %v2669_v2  ;;  %v3117_v2 = vld [vmem:[%s3561_s3 + $0x68] sm:$0xff] }
 0x43a   :  { %2194 = vmatprep.subr.mxu1 %v2618_v0 }
 0x43b   :  { %2195 = vmatpush3.msra.mxu1 %v2679_v3  ;;  %v3124_v3 = vld [vmem:[%s3561_s3 + $0x60] sm:$0xff] }
 0x43c   :  { %2196 = vmatprep.subr.mxu1 %v2618_v0 }
 0x43d   :  { %2197 = vmatpush3.msra.mxu1 %v2688_v4  ;;  %v3131_v4 = vld [vmem:[%s3561_s3 + $0x58] sm:$0xff] }
 0x43e   :  { %2198 = vmatprep.subr.mxu1 %v2618_v0 }
 0x43f   :  { %2199 = vmatpush3.msra.mxu1 %v2697_v5  ;;  %v3138_v5 = vld [vmem:[%s3561_s3 + $0x50] sm:$0xff] }
 0x440   :  { %2200 = vmatprep.subr.mxu1 %v2618_v0 }
 0x441   :  { %2201 = vmatpush3.msra.mxu1 %v2706_v6  ;;  %v3145_v6 = vld [vmem:[%s3561_s3 + $0x48] sm:$0xff] }
 0x442   :  { %2202 = vmatprep.subr.mxu1 %v2618_v0 }
 0x443   :  { %2203 = vmatpush3.msra.mxu1 %v2715_v7  ;;  %v3152_v7 = vld [vmem:[%s3561_s3 + $0x40] sm:$0xff] }
 0x444   :  { %2204 = vmatprep.subr.mxu1 %v2618_v0 }
 0x445   :  { %2205 = vmatpush3.msra.mxu1 %v2724_v8  ;;  %v3159_v8 = vld [vmem:[%s3561_s3 + $0x38] sm:$0xff] }
 0x446   :  { %2206 = vmatprep.subr.mxu1 %v2618_v0 }
 0x447   :  { %2207 = vmatpush3.msra.mxu1 %v2733_v9  ;;  %v3166_v9 = vld [vmem:[%s3561_s3 + $0x30] sm:$0xff] }
 0x448   :  { %2208 = vmatprep.subr.mxu1 %v2618_v0 }
 0x449   :  { %2209 = vmatpush3.msra.mxu1 %v2742_v10  ;;  %v3173_v10 = vld [vmem:[%s3561_s3 + $0x28] sm:$0xff] }
 0x44a   :  { %2210 = vmatprep.subr.mxu1 %v2618_v0 }
 0x44b   :  { %2211 = vmatpush3.msra.mxu1 %v2751_v11  ;;  %v3180_v11 = vld [vmem:[%s3561_s3 + $0x20] sm:$0xff] }
 0x44c   :  { %2212 = vmatprep.subr.mxu1 %v2618_v0 }
 0x44d   :  { %2213 = vmatpush3.msra.mxu1 %v2760_v12  ;;  %v3187_v12 = vld [vmem:[%s3561_s3 + $0x18] sm:$0xff] }
 0x44e   :  { %2214 = vmatprep.subr.mxu1 %v2618_v0 }
 0x44f   :  { %2215 = vmatpush3.msra.mxu1 %v2769_v13  ;;  %v3194_v13 = vld [vmem:[%s3561_s3 + $0x10] sm:$0xff] }
 0x450   :  { %2216 = vmatprep.subr.mxu1 %v2618_v0 }
 0x451   :  { %2217 = vmatpush3.msra.mxu1 %v2778_v14  ;;  %v3201_v14 = vld [vmem:[%s3561_s3 + $0x8] sm:$0xff] }
 0x452   :  { %2218 = vmatprep.subr.mxu1 %v2618_v0 }
 0x453   :  { %2219 = vmatpush3.msra.mxu1 %v2787_v15  ;;  %v3208_v15 = vld [vmem:[%s3561_s3] sm:$0xff] }
 0x454   :  { %2220 = vmatprep.subr.mxu1 %v2618_v0 }
 0x455   :  { %2221 = vmatpush3.msra.mxu1 %v2796_v16  ;;  %v1628_v16 = vld [vmem:[%s3559_s0 + $0x30] sm:$0xff] }
 0x456   :  { %2269 = vmatprep.subr.mxu1 %v2618_v0 }
 0x4f6   :  { %v575_v44 = vpop.f32.mrf.mxu1 }
 0x4f7   :  { %v579_v45 = vadd.f32 %v1627_v43, %v575_v44 }
 0x4f8   :  { %v2154_v46 = vpop.f32.mrf.mxu1 }
 0x4f9   :  { %2596 = vtanh.f32 %v579_v45 }
 0x506   :  { %v2597_v47 = vpop.eup %2596 }
 0x507   :  { %2188 = vmatmul.mubr.f32.vlgmr.msra.gmra.mxu0 %v2597_v47 }
 0x508   :  { %2226 = vmatpush3.msra.mxu0 %v791_v42  ;;  %2257 = vmatprep.mubr.f32.mxu0 %v2848_v21  ;;  %v1629_v21 = vld [vmem:[%s3559_s0 + $0x38] sm:$0xff] }
 0x509   :  { %2227 = vmatprep.subr.mxu0 %v790_v48 }
 0x50a   :  { %2228 = vmatpush3.msra.mxu0 %v790_v48 }
 0x50b   :  { %2229 = vmatprep.subr.mxu0 %v789_v49 }
 0x50c   :  { %2230 = vmatpush3.msra.mxu0 %v789_v49 }
 0x50d   :  { %2231 = vmatprep.subr.mxu0 %v788_v50 }
 0x50e   :  { %2232 = vmatpush3.msra.mxu0 %v788_v50 }
 0x50f   :  { %2233 = vmatprep.subr.mxu0 %v787_v51 }
 0x510   :  { %2234 = vmatpush3.msra.mxu0 %v787_v51 }
 0x511   :  { %2235 = vmatprep.subr.mxu0 %v786_v52 }
 0x512   :  { %2236 = vmatpush3.msra.mxu0 %v786_v52 }
 0x513   :  { %2237 = vmatprep.subr.mxu0 %v785_v53 }
 0x514   :  { %2238 = vmatpush3.msra.mxu0 %v785_v53 }
 0x515   :  { %2239 = vmatprep.subr.mxu0 %v784_v54 }
 0x516   :  { %2240 = vmatpush3.msra.mxu0 %v784_v54 }
 0x517   :  { %2241 = vmatprep.subr.mxu0 %v783_v55 }
 0x518   :  { %2242 = vmatpush3.msra.mxu0 %v783_v55 }
 0x519   :  { %2243 = vmatprep.subr.mxu0 %v782_v56 }
 0x51a   :  { %2244 = vmatpush3.msra.mxu0 %v782_v56 }
 0x51b   :  { %2245 = vmatprep.subr.mxu0 %v781_v57 }
 0x51c   :  { %2246 = vmatpush3.msra.mxu0 %v781_v57 }
 0x51d   :  { %2247 = vmatprep.subr.mxu0 %v780_v58 }
 0x51e   :  { %2248 = vmatpush3.msra.mxu0 %v780_v58 }
 0x51f   :  { %2249 = vmatprep.subr.mxu0 %v779_v59 }
 0x520   :  { %2250 = vmatpush3.msra.mxu0 %v779_v59 }
 0x521   :  { %2251 = vmatprep.subr.mxu0 %v778_v60 }
 0x522   :  { %2252 = vmatpush3.msra.mxu0 %v778_v60 }
 0x523   :  { %2253 = vmatprep.subr.mxu0 %v777_v61 }
 0x524   :  { %2254 = vmatpush3.msra.mxu0 %v777_v61 }
 0x525   :  { %2255 = vmatprep.subr.mxu0 %v776_v62 }
 0x526   :  { %2256 = vmatpush3.msra.mxu0 %v776_v62 }
 0x527   :  { %2258 = vmatmul.mubr.f32.vlgmr.msra.gmra.mxu0 %v2888_v26  ;;  %2304 = vmatprep.subr.mxu0 %v2618_v0 }
 0x528   :  { %2260 = vmatprep.mubr.f32.mxu0 %v2928_v31  ;;  %2305 = vmatpush3.msra.mxu0 %v3104_v63 }
 0x529   :  { %2306 = vmatprep.subr.mxu0 %v2618_v0 }
 0x52a   :  { %2307 = vmatpush3.msra.mxu0 %v3110_v1 }
 0x52b   :  { %2261 = vmatmul.mubr.f32.gmra.mxu0 %v2968_v36  ;;  %2308 = vmatprep.subr.mxu0 %v2618_v0 }
 0x52c   :  { %2263 = vmatprep.mubr.f32.mxu0 %v3007_v41  ;;  %2309 = vmatpush3.msra.mxu0 %v3117_v2 }
 0x52d   :  { %2310 = vmatprep.subr.mxu0 %v2618_v0 }
 0x52e   :  { %2311 = vmatpush3.msra.mxu0 %v3124_v3 }
 0x52f   :  { %2264 = vmatmul.mubr.f32.gmra.mxu0 %v2597_v47  ;;  %2312 = vmatprep.subr.mxu0 %v2618_v0 }
 0x530   :  { %2313 = vmatpush3.msra.mxu0 %v3131_v4 }
 0x531   :  { %2314 = vmatprep.subr.mxu0 %v2618_v0 }
 0x532   :  { %2315 = vmatpush3.msra.mxu0 %v3138_v5 }
 0x533   :  { %2316 = vmatprep.subr.mxu0 %v2618_v0 }
 0x534   :  { %2317 = vmatpush3.msra.mxu0 %v3145_v6 }
 0x535   :  { %2318 = vmatprep.subr.mxu0 %v2618_v0 }
 0x536   :  { %2319 = vmatpush3.msra.mxu0 %v3152_v7 }
 0x537   :  { %2320 = vmatprep.subr.mxu0 %v2618_v0 }
 0x538   :  { %2321 = vmatpush3.msra.mxu0 %v3159_v8 }
 0x539   :  { %2322 = vmatprep.subr.mxu0 %v2618_v0 }
 0x53a   :  { %2323 = vmatpush3.msra.mxu0 %v3166_v9 }
 0x53b   :  { %2324 = vmatprep.subr.mxu0 %v2618_v0 }
 0x53c   :  { %2325 = vmatpush3.msra.mxu0 %v3173_v10 }
 0x53d   :  { %2326 = vmatprep.subr.mxu0 %v2618_v0 }
 0x53e   :  { %2327 = vmatpush3.msra.mxu0 %v3180_v11 }
 0x53f   :  { %2328 = vmatprep.subr.mxu0 %v2618_v0 }
 0x540   :  { %2329 = vmatpush3.msra.mxu0 %v3187_v12 }
 0x541   :  { %2330 = vmatprep.subr.mxu0 %v2618_v0 }
 0x542   :  { %2331 = vmatpush3.msra.mxu0 %v3194_v13 }
 0x543   :  { %2332 = vmatprep.subr.mxu0 %v2618_v0 }
 0x544   :  { %2333 = vmatpush3.msra.mxu0 %v3201_v14 }
 0x545   :  { %2334 = vmatprep.subr.mxu0 %v2618_v0 }
 0x546   :  { %2335 = vmatpush3.msra.mxu0 %v3208_v15 }
 0x547   :  { %2374 = vmatprep.subr.mxu0 %v2618_v0 }
 0x5c7   :  { %v667_v17 = vpop.f32.mrf.mxu0 }
 0x5c8   :  { %v671_v18 = vadd.f32 %v1628_v16, %v667_v17  ;;  %v1531_v16 = vld [vmem:[%s3563_s5 + $0x30] sm:$0xff]  ;;  %v1530_v17 = vld [vmem:[%s3563_s5 + $0x28] sm:$0xff] }
 0x5c9   :  { %v2189_v19 = vpop.f32.mrf.mxu0 }
 0x5ca   :  { %2598 = vtanh.f32 %v671_v18  ;;  %v1529_v18 = vld [vmem:[%s3563_s5 + $0x20] sm:$0xff]  ;;  %v1528_v19 = vld [vmem:[%s3563_s5 + $0x18] sm:$0xff] }
 0x5d7   :  { %v2599_v20 = vpop.eup %2598 }
 0x5d8   :  { %2223 = vmatmul.mubr.f32.vlgmr.msra.gmra.mxu1 %v2599_v20  ;;  %2266 = vmatprep.mubr.f32.mxu0 %v2599_v20  ;;  %v1527_v20 = vld [vmem:[%s3563_s5 + $0x10] sm:$0xff] }
 0x5d9   :  { %2270 = vmatpush3.msra.mxu1 %v3104_v63  ;;  %2301 = vmatprep.mubr.msk.f32.mxu1 %vm2619_vm0, %v2618_v0 }
 0x5da   :  { %2271 = vmatprep.subr.mxu1 %v2618_v0 }
 0x5db   :  { %2272 = vmatpush3.msra.mxu1 %v3110_v1 }
 0x5dc   :  { %2273 = vmatprep.subr.mxu1 %v2618_v0 }
 0x5dd   :  { %2274 = vmatpush3.msra.mxu1 %v3117_v2 }
 0x5de   :  { %2275 = vmatprep.subr.mxu1 %v2618_v0 }
 0x5df   :  { %2276 = vmatpush3.msra.mxu1 %v3124_v3 }
 0x5e0   :  { %2277 = vmatprep.subr.mxu1 %v2618_v0 }
 0x5e1   :  { %2278 = vmatpush3.msra.mxu1 %v3131_v4 }
 0x5e2   :  { %2279 = vmatprep.subr.mxu1 %v2618_v0 }
 0x5e3   :  { %2280 = vmatpush3.msra.mxu1 %v3138_v5 }
 0x5e4   :  { %2281 = vmatprep.subr.mxu1 %v2618_v0 }
 0x5e5   :  { %2282 = vmatpush3.msra.mxu1 %v3145_v6 }
 0x5e6   :  { %2283 = vmatprep.subr.mxu1 %v2618_v0 }
 0x5e7   :  { %2284 = vmatpush3.msra.mxu1 %v3152_v7  ;;  %v2259_v26 = vpop.f32.mrf.mxu0 }
 0x5e8   :  { %2285 = vmatprep.subr.mxu1 %v2618_v0  ;;  %v871_v40 = vadd.f32 %v2259_v26, %v3293_v28 }
 0x5e9   :  { %2286 = vmatpush3.msra.mxu1 %v3159_v8  ;;  %v865_v27 = vpop.f32.mrf.mxu0 }
 0x5ea   :  { %2287 = vmatprep.subr.mxu1 %v2618_v0  ;;  %v866_v29 = vadd.f32 %v3293_v28, %v865_v27 }
 0x5eb   :  { %2288 = vmatpush3.msra.mxu1 %v3166_v9  ;;  %v3330_v34 = vpop.f32.mrf.mxu0 }
 0x5ec   :  { %2289 = vmatprep.subr.mxu1 %v2618_v0  ;;  %v881_v50 = vadd.f32 %v3330_v34, %v3293_v28 }
 0x5ed   :  { %2290 = vmatpush3.msra.mxu1 %v3173_v10  ;;  %v875_v35 = vpop.f32.mrf.mxu0 }
 0x5ee   :  { %2291 = vmatprep.subr.mxu1 %v2618_v0  ;;  %v876_v45 = vadd.f32 %v3293_v28, %v875_v35 }
 0x5ef   :  { %2292 = vmatpush3.msra.mxu1 %v3180_v11  ;;  %v3332_v36 = vpop.f32.mrf.mxu0 }
 0x5f0   :  { %2293 = vmatprep.subr.mxu1 %v2618_v0  ;;  %v891_v60 = vadd.f32 %v3332_v36, %v3293_v28 }
 0x5f1   :  { %2294 = vmatpush3.msra.mxu1 %v3187_v12  ;;  %v3334_v37 = vpop.f32.mrf.mxu0 }
 0x5f2   :  { %2295 = vmatprep.subr.mxu1 %v2618_v0  ;;  %v886_v55 = vadd.f32 %v3293_v28, %v3334_v37 }
 0x5f3   :  { %2296 = vmatpush3.msra.mxu1 %v3194_v13 }
 0x5f4   :  { %2297 = vmatprep.subr.mxu1 %v2618_v0 }
 0x5f5   :  { %2298 = vmatpush3.msra.mxu1 %v3201_v14 }
 0x5f6   :  { %2299 = vmatprep.subr.mxu1 %v2618_v0 }
 0x5f7   :  { %2300 = vmatpush3.msra.mxu1 %v3208_v15 }
 0x5f8   :  { %2302 = vmatmul.mubr.f32.vlgmr.msra.gmra.mxu1 %v2618_v0  ;;  %2339 = vmatprep.subr.mxu1 %v2618_v0 }
 0x5f9   :  { %2340 = vmatpush3.msra.mxu1 %v3104_v63  ;;  %2371 = vmatprep.mubr.msk.f32.mxu1 %vm2619_vm0, %v2618_v0 }
 0x5fa   :  { %2341 = vmatprep.subr.mxu1 %v2618_v0 }
 0x5fb   :  { %2342 = vmatpush3.msra.mxu1 %v3110_v1 }
 0x5fc   :  { %2343 = vmatprep.subr.mxu1 %v2618_v0 }
 0x5fd   :  { %2344 = vmatpush3.msra.mxu1 %v3117_v2 }
 0x5fe   :  { %2345 = vmatprep.subr.mxu1 %v2618_v0 }
 0x5ff   :  { %2346 = vmatpush3.msra.mxu1 %v3124_v3 }
 0x600   :  { %2347 = vmatprep.subr.mxu1 %v2618_v0 }
 0x601   :  { %2348 = vmatpush3.msra.mxu1 %v3131_v4 }
 0x602   :  { %2349 = vmatprep.subr.mxu1 %v2618_v0 }
 0x603   :  { %2350 = vmatpush3.msra.mxu1 %v3138_v5 }
 0x604   :  { %2351 = vmatprep.subr.mxu1 %v2618_v0 }
 0x605   :  { %2352 = vmatpush3.msra.mxu1 %v3145_v6 }
 0x606   :  { %2353 = vmatprep.subr.mxu1 %v2618_v0 }
 0x607   :  { %2354 = vmatpush3.msra.mxu1 %v3152_v7 }
 0x608   :  { %2355 = vmatprep.subr.mxu1 %v2618_v0 }
 0x609   :  { %2356 = vmatpush3.msra.mxu1 %v3159_v8 }
 0x60a   :  { %2357 = vmatprep.subr.mxu1 %v2618_v0 }
 0x60b   :  { %2358 = vmatpush3.msra.mxu1 %v3166_v9 }
 0x60c   :  { %2359 = vmatprep.subr.mxu1 %v2618_v0 }
 0x60d   :  { %2360 = vmatpush3.msra.mxu1 %v3173_v10 }
 0x60e   :  { %2361 = vmatprep.subr.mxu1 %v2618_v0 }
 0x60f   :  { %2362 = vmatpush3.msra.mxu1 %v3180_v11 }
 0x610   :  { %2363 = vmatprep.subr.mxu1 %v2618_v0 }
 0x611   :  { %2364 = vmatpush3.msra.mxu1 %v3187_v12 }
 0x612   :  { %2365 = vmatprep.subr.mxu1 %v2618_v0 }
 0x613   :  { %2366 = vmatpush3.msra.mxu1 %v3194_v13 }
 0x614   :  { %2367 = vmatprep.subr.mxu1 %v2618_v0 }
 0x615   :  { %2368 = vmatpush3.msra.mxu1 %v3201_v14 }
 0x616   :  { %2369 = vmatprep.subr.mxu1 %v2618_v0 }
 0x617   :  { %2370 = vmatpush3.msra.mxu1 %v3208_v15 }
 0x618   :  { %2409 = vmatprep.subr.mxu1 %v2618_v0 }
 0x698   :  { %v759_v22 = vpop.f32.mrf.mxu1 }
 0x699   :  { %v763_v23 = vadd.f32 %v1629_v21, %v759_v22  ;;  %v1526_v21 = vld [vmem:[%s3563_s5 + $0x8] sm:$0xff]  ;;  %v1525_v22 = vld [vmem:[%s3563_s5] sm:$0xff] }
 0x69a   :  { %v2224_v24 = vpop.f32.mrf.mxu1 }
 0x69b   :  { %2600 = vtanh.f32 %v763_v23 }
 0x6a8   :  { %v2601_v25 = vpop.eup %2600 }
 0x6a9   :  { %2267 = vmatmul.mubr.f32.gmra.mxu0 %v2601_v25 }
 0x6aa   :  { %2336 = vmatprep.mubr.msk.f32.mxu0 %vm2619_vm0, %v2618_v0 }
 0x6b8   :  { %v997_v30 = vpop.f32.mrf.mxu1 }
 0x6b9   :  { %v1001_v31 = vadd.f32 %v997_v30, %v866_v29  ;;  %v1631_v29 = vld [vmem:[%s3564_s6] ss:$0 sm:$0xff] }
 0x6ba   :  { %v2303_v32 = vpop.f32.mrf.mxu1 }
 0x6bb   :  { %2602 = vtanh.f32 %v1001_v31 }
 0x6c8   :  { %v2603_v33 = vpop.eup %2602 }
 0x6c9   :  { %2337 = vmatmul.mubr.f32.vlgmr.msra.gmra.mxu0 %v2603_v33 }
 0x6ca   :  { %2375 = vmatpush3.msra.mxu0 %v3104_v63  ;;  %2406 = vmatprep.mubr.msk.f32.mxu0 %vm2619_vm0, %v2618_v0 }
 0x6cb   :  { %2376 = vmatprep.subr.mxu0 %v2618_v0 }
 0x6cc   :  { %2377 = vmatpush3.msra.mxu0 %v3110_v1 }
 0x6cd   :  { %2378 = vmatprep.subr.mxu0 %v2618_v0 }
 0x6ce   :  { %2379 = vmatpush3.msra.mxu0 %v3117_v2 }
 0x6cf   :  { %2380 = vmatprep.subr.mxu0 %v2618_v0 }
 0x6d0   :  { %2381 = vmatpush3.msra.mxu0 %v3124_v3 }
 0x6d1   :  { %2382 = vmatprep.subr.mxu0 %v2618_v0 }
 0x6d2   :  { %2383 = vmatpush3.msra.mxu0 %v3131_v4 }
 0x6d3   :  { %2384 = vmatprep.subr.mxu0 %v2618_v0 }
 0x6d4   :  { %2385 = vmatpush3.msra.mxu0 %v3138_v5 }
 0x6d5   :  { %2386 = vmatprep.subr.mxu0 %v2618_v0 }
 0x6d6   :  { %2387 = vmatpush3.msra.mxu0 %v3145_v6 }
 0x6d7   :  { %2388 = vmatprep.subr.mxu0 %v2618_v0 }
 0x6d8   :  { %2389 = vmatpush3.msra.mxu0 %v3152_v7 }
 0x6d9   :  { %2390 = vmatprep.subr.mxu0 %v2618_v0 }
 0x6da   :  { %2391 = vmatpush3.msra.mxu0 %v3159_v8 }
 0x6db   :  { %2392 = vmatprep.subr.mxu0 %v2618_v0 }
 0x6dc   :  { %2393 = vmatpush3.msra.mxu0 %v3166_v9 }
 0x6dd   :  { %2394 = vmatprep.subr.mxu0 %v2618_v0 }
 0x6de   :  { %2395 = vmatpush3.msra.mxu0 %v3173_v10 }
 0x6df   :  { %2396 = vmatprep.subr.mxu0 %v2618_v0 }
 0x6e0   :  { %2397 = vmatpush3.msra.mxu0 %v3180_v11 }
 0x6e1   :  { %2398 = vmatprep.subr.mxu0 %v2618_v0 }
 0x6e2   :  { %2399 = vmatpush3.msra.mxu0 %v3187_v12 }
 0x6e3   :  { %2400 = vmatprep.subr.mxu0 %v2618_v0 }
 0x6e4   :  { %2401 = vmatpush3.msra.mxu0 %v3194_v13 }
 0x6e5   :  { %2402 = vmatprep.subr.mxu0 %v2618_v0 }
 0x6e6   :  { %2403 = vmatpush3.msra.mxu0 %v3201_v14 }
 0x6e7   :  { %2404 = vmatprep.subr.mxu0 %v2618_v0 }
 0x6e8   :  { %2405 = vmatpush3.msra.mxu0 %v3208_v15 }
 0x6e9   :  { %2444 = vmatprep.subr.mxu0 %v2618_v0 }
 0x769   :  { %v3336_v38 = vpop.f32.mrf.mxu0 }
 0x76a   :  { %v901_v23 = vadd.f32 %v3336_v38, %v3293_v28 }
 0x76b   :  { %v3338_v39 = vpop.f32.mrf.mxu0 }
 0x789   :  { %v1071_v41 = vpop.f32.mrf.mxu0 }
 0x78a   :  { %v1075_v42 = vadd.f32 %v1071_v41, %v871_v40 }
 0x78b   :  { %v2338_v43 = vpop.f32.mrf.mxu0 }
 0x78c   :  { %2604 = vtanh.f32 %v1075_v42 }
 0x799   :  { %v2605_v44 = vpop.eup %2604 }
 0x79a   :  { %2372 = vmatmul.mubr.f32.vlgmr.msra.gmra.mxu1 %v2605_v44 }
 0x79b   :  { %2410 = vmatpush3.msra.mxu1 %v3104_v63  ;;  %2441 = vmatprep.mubr.msk.f32.mxu1 %vm2619_vm0, %v2618_v0 }
 0x79c   :  { %2411 = vmatprep.subr.mxu1 %v2618_v0 }
 0x79d   :  { %2412 = vmatpush3.msra.mxu1 %v3110_v1 }
 0x79e   :  { %2413 = vmatprep.subr.mxu1 %v2618_v0 }
 0x79f   :  { %2414 = vmatpush3.msra.mxu1 %v3117_v2 }
 0x7a0   :  { %2415 = vmatprep.subr.mxu1 %v2618_v0 }
 0x7a1   :  { %2416 = vmatpush3.msra.mxu1 %v3124_v3 }
 0x7a2   :  { %2417 = vmatprep.subr.mxu1 %v2618_v0 }
 0x7a3   :  { %2418 = vmatpush3.msra.mxu1 %v3131_v4 }
 0x7a4   :  { %2419 = vmatprep.subr.mxu1 %v2618_v0 }
 0x7a5   :  { %2420 = vmatpush3.msra.mxu1 %v3138_v5 }
 0x7a6   :  { %2421 = vmatprep.subr.mxu1 %v2618_v0 }
 0x7a7   :  { %2422 = vmatpush3.msra.mxu1 %v3145_v6 }
 0x7a8   :  { %2423 = vmatprep.subr.mxu1 %v2618_v0 }
 0x7a9   :  { %2424 = vmatpush3.msra.mxu1 %v3152_v7 }
 0x7aa   :  { %2425 = vmatprep.subr.mxu1 %v2618_v0 }
 0x7ab   :  { %2426 = vmatpush3.msra.mxu1 %v3159_v8 }
 0x7ac   :  { %2427 = vmatprep.subr.mxu1 %v2618_v0 }
 0x7ad   :  { %2428 = vmatpush3.msra.mxu1 %v3166_v9 }
 0x7ae   :  { %2429 = vmatprep.subr.mxu1 %v2618_v0 }
 0x7af   :  { %2430 = vmatpush3.msra.mxu1 %v3173_v10 }
 0x7b0   :  { %2431 = vmatprep.subr.mxu1 %v2618_v0 }
 0x7b1   :  { %2432 = vmatpush3.msra.mxu1 %v3180_v11 }
 0x7b2   :  { %2433 = vmatprep.subr.mxu1 %v2618_v0 }
 0x7b3   :  { %2434 = vmatpush3.msra.mxu1 %v3187_v12 }
 0x7b4   :  { %2435 = vmatprep.subr.mxu1 %v2618_v0 }
 0x7b5   :  { %2436 = vmatpush3.msra.mxu1 %v3194_v13 }
 0x7b6   :  { %2437 = vmatprep.subr.mxu1 %v2618_v0 }
 0x7b7   :  { %2438 = vmatpush3.msra.mxu1 %v3201_v14 }
 0x7b8   :  { %2439 = vmatprep.subr.mxu1 %v2618_v0 }
 0x7b9   :  { %2440 = vmatpush3.msra.mxu1 %v3208_v15 }
 0x7ba   :  { %2479 = vmatprep.subr.mxu1 %v2618_v0 }
 0x85a   :  { %v1145_v46 = vpop.f32.mrf.mxu1 }
 0x85b   :  { %v1149_v47 = vadd.f32 %v1145_v46, %v876_v45 }
 0x85c   :  { %v2373_v48 = vpop.f32.mrf.mxu1 }
 0x85d   :  { %2606 = vtanh.f32 %v1149_v47 }
 0x86a   :  { %v2607_v49 = vpop.eup %2606 }
 0x86b   :  { %2407 = vmatmul.mubr.f32.vlgmr.msra.gmra.mxu0 %v2607_v49 }
 0x86c   :  { %2445 = vmatpush3.msra.mxu0 %v3104_v63  ;;  %2476 = vmatprep.mubr.msk.f32.mxu0 %vm2619_vm0, %v2618_v0 }
 0x86d   :  { %2446 = vmatprep.subr.mxu0 %v2618_v0 }
 0x86e   :  { %2447 = vmatpush3.msra.mxu0 %v3110_v1 }
 0x86f   :  { %2448 = vmatprep.subr.mxu0 %v2618_v0 }
 0x870   :  { %2449 = vmatpush3.msra.mxu0 %v3117_v2 }
 0x871   :  { %2450 = vmatprep.subr.mxu0 %v2618_v0 }
 0x872   :  { %2451 = vmatpush3.msra.mxu0 %v3124_v3 }
 0x873   :  { %2452 = vmatprep.subr.mxu0 %v2618_v0 }
 0x874   :  { %2453 = vmatpush3.msra.mxu0 %v3131_v4 }
 0x875   :  { %2454 = vmatprep.subr.mxu0 %v2618_v0 }
 0x876   :  { %2455 = vmatpush3.msra.mxu0 %v3138_v5 }
 0x877   :  { %2456 = vmatprep.subr.mxu0 %v2618_v0 }
 0x878   :  { %2457 = vmatpush3.msra.mxu0 %v3145_v6 }
 0x879   :  { %2458 = vmatprep.subr.mxu0 %v2618_v0 }
 0x87a   :  { %2459 = vmatpush3.msra.mxu0 %v3152_v7 }
 0x87b   :  { %2460 = vmatprep.subr.mxu0 %v2618_v0 }
 0x87c   :  { %2461 = vmatpush3.msra.mxu0 %v3159_v8 }
 0x87d   :  { %2462 = vmatprep.subr.mxu0 %v2618_v0 }
 0x87e   :  { %2463 = vmatpush3.msra.mxu0 %v3166_v9 }
 0x87f   :  { %2464 = vmatprep.subr.mxu0 %v2618_v0 }
 0x880   :  { %2465 = vmatpush3.msra.mxu0 %v3173_v10 }
 0x881   :  { %2466 = vmatprep.subr.mxu0 %v2618_v0 }
 0x882   :  { %2467 = vmatpush3.msra.mxu0 %v3180_v11 }
 0x883   :  { %2468 = vmatprep.subr.mxu0 %v2618_v0 }
 0x884   :  { %2469 = vmatpush3.msra.mxu0 %v3187_v12 }
 0x885   :  { %2470 = vmatprep.subr.mxu0 %v2618_v0 }
 0x886   :  { %2471 = vmatpush3.msra.mxu0 %v3194_v13 }
 0x887   :  { %2472 = vmatprep.subr.mxu0 %v2618_v0 }
 0x888   :  { %2473 = vmatpush3.msra.mxu0 %v3201_v14 }
 0x889   :  { %2474 = vmatprep.subr.mxu0 %v2618_v0 }
 0x88a   :  { %2475 = vmatpush3.msra.mxu0 %v3208_v15 }
 0x88b   :  { %2514 = vmatprep.subr.mxu0 %v2618_v0 }
 0x92b   :  { %v1219_v51 = vpop.f32.mrf.mxu0 }
 0x92c   :  { %v1223_v52 = vadd.f32 %v1219_v51, %v881_v50 }
 0x92d   :  { %v2408_v53 = vpop.f32.mrf.mxu0 }
 0x92e   :  { %2608 = vtanh.f32 %v1223_v52 }
 0x93b   :  { %v2609_v54 = vpop.eup %2608 }
 0x93c   :  { %2442 = vmatmul.mubr.f32.vlgmr.msra.gmra.mxu1 %v2609_v54 }
 0x93d   :  { %2480 = vmatpush3.msra.mxu1 %v3104_v63  ;;  %2511 = vmatprep.mubr.msk.f32.mxu1 %vm2619_vm0, %v2618_v0 }
 0x93e   :  { %2481 = vmatprep.subr.mxu1 %v2618_v0 }
 0x93f   :  { %2482 = vmatpush3.msra.mxu1 %v3110_v1 }
 0x940   :  { %2483 = vmatprep.subr.mxu1 %v2618_v0 }
 0x941   :  { %2484 = vmatpush3.msra.mxu1 %v3117_v2 }
 0x942   :  { %2485 = vmatprep.subr.mxu1 %v2618_v0 }
 0x943   :  { %2486 = vmatpush3.msra.mxu1 %v3124_v3 }
 0x944   :  { %2487 = vmatprep.subr.mxu1 %v2618_v0 }
 0x945   :  { %2488 = vmatpush3.msra.mxu1 %v3131_v4 }
 0x946   :  { %2489 = vmatprep.subr.mxu1 %v2618_v0 }
 0x947   :  { %2490 = vmatpush3.msra.mxu1 %v3138_v5 }
 0x948   :  { %2491 = vmatprep.subr.mxu1 %v2618_v0 }
 0x949   :  { %2492 = vmatpush3.msra.mxu1 %v3145_v6 }
 0x94a   :  { %2493 = vmatprep.subr.mxu1 %v2618_v0 }
 0x94b   :  { %2494 = vmatpush3.msra.mxu1 %v3152_v7 }
 0x94c   :  { %2495 = vmatprep.subr.mxu1 %v2618_v0 }
 0x94d   :  { %2496 = vmatpush3.msra.mxu1 %v3159_v8 }
 0x94e   :  { %2497 = vmatprep.subr.mxu1 %v2618_v0 }
 0x94f   :  { %2498 = vmatpush3.msra.mxu1 %v3166_v9 }
 0x950   :  { %2499 = vmatprep.subr.mxu1 %v2618_v0 }
 0x951   :  { %2500 = vmatpush3.msra.mxu1 %v3173_v10 }
 0x952   :  { %2501 = vmatprep.subr.mxu1 %v2618_v0 }
 0x953   :  { %2502 = vmatpush3.msra.mxu1 %v3180_v11 }
 0x954   :  { %2503 = vmatprep.subr.mxu1 %v2618_v0 }
 0x955   :  { %2504 = vmatpush3.msra.mxu1 %v3187_v12 }
 0x956   :  { %2505 = vmatprep.subr.mxu1 %v2618_v0 }
 0x957   :  { %2506 = vmatpush3.msra.mxu1 %v3194_v13 }
 0x958   :  { %2507 = vmatprep.subr.mxu1 %v2618_v0 }
 0x959   :  { %2508 = vmatpush3.msra.mxu1 %v3201_v14 }
 0x95a   :  { %2509 = vmatprep.subr.mxu1 %v2618_v0 }
 0x95b   :  { %2510 = vmatpush3.msra.mxu1 %v3208_v15 }
 0x95c   :  { %2549 = vmatprep.subr.mxu1 %v2618_v0 }
 0x9fc   :  { %v1293_v56 = vpop.f32.mrf.mxu1 }
 0x9fd   :  { %v1297_v57 = vadd.f32 %v1293_v56, %v886_v55 }
 0x9fe   :  { %v2443_v58 = vpop.f32.mrf.mxu1 }
 0x9ff   :  { %2610 = vtanh.f32 %v1297_v57 }
 0xa0c   :  { %v2611_v59 = vpop.eup %2610 }
 0xa0d   :  { %2477 = vmatmul.mubr.f32.vlgmr.msra.gmra.mxu0 %v2611_v59 }
 0xa0e   :  { %2515 = vmatpush3.msra.mxu0 %v3104_v63  ;;  %2546 = vmatprep.mubr.msk.f32.mxu0 %vm2619_vm0, %v2618_v0 }
 0xa0f   :  { %2516 = vmatprep.subr.mxu0 %v2618_v0 }
 0xa10   :  { %2517 = vmatpush3.msra.mxu0 %v3110_v1 }
 0xa11   :  { %2518 = vmatprep.subr.mxu0 %v2618_v0 }
 0xa12   :  { %2519 = vmatpush3.msra.mxu0 %v3117_v2  ;;  %v1540_v2 = vld [vmem:[%s3563_s5 + $0x78] sm:$0xff] }
 0xa13   :  { %2520 = vmatprep.subr.mxu0 %v2618_v0 }
 0xa14   :  { %2521 = vmatpush3.msra.mxu0 %v3124_v3  ;;  %v1539_v3 = vld [vmem:[%s3563_s5 + $0x70] sm:$0xff] }
 0xa15   :  { %2522 = vmatprep.subr.mxu0 %v2618_v0 }
 0xa16   :  { %2523 = vmatpush3.msra.mxu0 %v3131_v4  ;;  %v1538_v4 = vld [vmem:[%s3563_s5 + $0x68] sm:$0xff] }
 0xa17   :  { %2524 = vmatprep.subr.mxu0 %v2618_v0 }
 0xa18   :  { %2525 = vmatpush3.msra.mxu0 %v3138_v5  ;;  %v1537_v5 = vld [vmem:[%s3563_s5 + $0x60] sm:$0xff] }
 0xa19   :  { %2526 = vmatprep.subr.mxu0 %v2618_v0 }
 0xa1a   :  { %2527 = vmatpush3.msra.mxu0 %v3145_v6  ;;  %v1536_v6 = vld [vmem:[%s3563_s5 + $0x58] sm:$0xff] }
 0xa1b   :  { %2528 = vmatprep.subr.mxu0 %v2618_v0 }
 0xa1c   :  { %2529 = vmatpush3.msra.mxu0 %v3152_v7  ;;  %v1535_v7 = vld [vmem:[%s3563_s5 + $0x50] sm:$0xff] }
 0xa1d   :  { %2530 = vmatprep.subr.mxu0 %v2618_v0 }
 0xa1e   :  { %2531 = vmatpush3.msra.mxu0 %v3159_v8  ;;  %v1534_v8 = vld [vmem:[%s3563_s5 + $0x48] sm:$0xff] }
 0xa1f   :  { %2532 = vmatprep.subr.mxu0 %v2618_v0 }
 0xa20   :  { %2533 = vmatpush3.msra.mxu0 %v3166_v9  ;;  %v896_v9 = vadd.f32 %v3293_v28, %v3338_v39 }
 0xa21   :  { %2534 = vmatprep.subr.mxu0 %v2618_v0 }
 0xa22   :  { %2535 = vmatpush3.msra.mxu0 %v3173_v10 }
 0xa23   :  { %2536 = vmatprep.subr.mxu0 %v2618_v0 }
 0xa24   :  { %2537 = vmatpush3.msra.mxu0 %v3180_v11 }
 0xa25   :  { %2538 = vmatprep.subr.mxu0 %v2618_v0 }
 0xa26   :  { %2539 = vmatpush3.msra.mxu0 %v3187_v12 }
 0xa27   :  { %2540 = vmatprep.subr.mxu0 %v2618_v0 }
 0xa28   :  { %2541 = vmatpush3.msra.mxu0 %v3194_v13 }
 0xa29   :  { %2542 = vmatprep.subr.mxu0 %v2618_v0 }
 0xa2a   :  { %2543 = vmatpush3.msra.mxu0 %v3201_v14  ;;  %v1533_v14 = vld [vmem:[%s3563_s5 + $0x40] sm:$0xff] }
 0xa2b   :  { %2544 = vmatprep.subr.mxu0 %v2618_v0 }
 0xa2c   :  { %2545 = vmatpush3.msra.mxu0 %v3208_v15  ;;  %v1532_v15 = vld [vmem:[%s3563_s5 + $0x38] sm:$0xff] }
 0xacd   :  { %v1367_v61 = vpop.f32.mrf.mxu0 }
 0xace   :  { %v1371_v62 = vadd.f32 %v1367_v61, %v891_v60 }
 0xacf   :  { %v2478_v63 = vpop.f32.mrf.mxu0 }
 0xad0   :  { %2612 = vtanh.f32 %v1371_v62 }
 0xadd   :  { %v2613_v1 = vpop.eup %2612 }
 0xade   :  { %2512 = vmatmul.mubr.f32.vlgmr.msra.gmra.mxu1 %v2613_v1 }
 0xadf   :  { %2581 = vmatprep.mubr.msk.f32.mxu1 %vm2619_vm0, %v2618_v0  ;;  %2550 = vmatpush3.msra.mxu1 %v1540_v2 }
 0xae0   :  { %2551 = vmatprep.subr.mxu1 %v2618_v0 }
 0xae1   :  { %2552 = vmatpush3.msra.mxu1 %v1539_v3 }
 0xae2   :  { %2553 = vmatprep.subr.mxu1 %v2618_v0 }
 0xae3   :  { %2554 = vmatpush3.msra.mxu1 %v1538_v4 }
 0xae4   :  { %2555 = vmatprep.subr.mxu1 %v2618_v0 }
 0xae5   :  { %2556 = vmatpush3.msra.mxu1 %v1537_v5 }
 0xae6   :  { %2557 = vmatprep.subr.mxu1 %v2618_v0 }
 0xae7   :  { %2558 = vmatpush3.msra.mxu1 %v1536_v6 }
 0xae8   :  { %2559 = vmatprep.subr.mxu1 %v2618_v0 }
 0xae9   :  { %2560 = vmatpush3.msra.mxu1 %v1535_v7 }
 0xaea   :  { %2561 = vmatprep.subr.mxu1 %v2618_v0 }
 0xaeb   :  { %2562 = vmatpush3.msra.mxu1 %v1534_v8 }
 0xaec   :  { %2563 = vmatprep.subr.mxu1 %v2618_v0 }
 0xaed   :  { %2564 = vmatpush3.msra.mxu1 %v1533_v14 }
 0xaee   :  { %2565 = vmatprep.subr.mxu1 %v2618_v0 }
 0xaef   :  { %2566 = vmatpush3.msra.mxu1 %v1532_v15 }
 0xaf0   :  { %2567 = vmatprep.subr.mxu1 %v2618_v0 }
 0xaf1   :  { %2568 = vmatpush3.msra.mxu1 %v1531_v16 }
 0xaf2   :  { %2569 = vmatprep.subr.mxu1 %v2618_v0 }
 0xaf3   :  { %2570 = vmatpush3.msra.mxu1 %v1530_v17 }
 0xaf4   :  { %2571 = vmatprep.subr.mxu1 %v2618_v0 }
 0xaf5   :  { %2572 = vmatpush3.msra.mxu1 %v1529_v18 }
 0xaf6   :  { %2573 = vmatprep.subr.mxu1 %v2618_v0 }
 0xaf7   :  { %2574 = vmatpush3.msra.mxu1 %v1528_v19 }
 0xaf8   :  { %2575 = vmatprep.subr.mxu1 %v2618_v0 }
 0xaf9   :  { %2576 = vmatpush3.msra.mxu1 %v1527_v20 }
 0xafa   :  { %2577 = vmatprep.subr.mxu1 %v2618_v0 }
 0xafb   :  { %2578 = vmatpush3.msra.mxu1 %v1526_v21 }
 0xafc   :  { %2579 = vmatprep.subr.mxu1 %v2618_v0 }
 0xafd   :  { %2580 = vmatpush3.msra.mxu1 %v1525_v22 }
 0xb9e   :  { %v1441_v10 = vpop.f32.mrf.mxu1 }
 0xb9f   :  { %v1445_v11 = vadd.f32 %v1441_v10, %v896_v9 }
 0xba0   :  { %v2513_v12 = vpop.f32.mrf.mxu1 }
 0xba1   :  { %2614 = vtanh.f32 %v1445_v11 }
 0xbae   :  { %v2615_v13 = vpop.eup %2614 }
 0xbaf   :  { %2547 = vmatmul.mubr.f32.vlgmr.msra.gmra.mxu0 %v2615_v13 }
 0xc6f   :  { %v1515_v24 = vpop.f32.mrf.mxu0 }
 0xc70   :  { %v1519_v25 = vadd.f32 %v1515_v24, %v901_v23 }
 0xc71   :  { %v2548_v26 = vpop.f32.mrf.mxu0 }
 0xc72   :  { %2616 = vtanh.f32 %v1519_v25 }
 0xc7f   :  { %v2617_v27 = vpop.eup %2616 }
 0xc80   :  { %2582 = vmatmul.mubr.f32.vlgmr.msra.gmra.mxu1 %v2617_v27 }
 0xd40   :  { %v1614_v30 = vpop.f32.mrf.mxu1 }
 0xd41   :  { %v1615_v31 = vadd.f32 %v1631_v29, %v1614_v30 }
 0xd42   :  { %v2583_v32 = vpop.f32.mrf.mxu1 }
 0xd43   :  { %1618 = vst [vmem:[%s3565_s7] sm:$0xff] %v1615_v31 }

</bundles_post_ra>
